<compile_context>
chip_gen: v5e
topology: v5e:2x2
jax: 0.10.0
libtpu: 0.0.40
codegen_flags: <defaults>
</compile_context>

<pallas_src>
import functools

import jax
import jax.numpy as jnp
from jax import lax
from jax.experimental import pallas as pl
from jax.experimental.pallas import tpu as pltpu


# ----------------------------------------------------------------------------
# Helpers
# ----------------------------------------------------------------------------

def _layer_norm(x, gamma, beta, eps=1e-5):
    """torch.nn.LayerNorm over last dim (biased variance)."""
    mean = jnp.mean(x, axis=-1, keepdims=True)
    var = jnp.mean((x - mean) ** 2, axis=-1, keepdims=True)
    return (x - mean) * lax.rsqrt(var + eps) * gamma + beta


def _round_up(n, m):
    return ((n + m - 1) // m) * m


# ----------------------------------------------------------------------------
# Fused forward kernel (one grid step == one batch element)
# ----------------------------------------------------------------------------

def _fused_forward_kernel(
    x_ref,                      # (1, L, F)
    proj_w_ref, proj_b_ref,     # (F, D), (1, D)
    wqkv_ref, bqkv_ref,         # (NL, D, 3D), (NL, 1, 3D)
    wo_ref, bo_ref,             # (NL, D, D),  (NL, 1, D)
    g1_ref, be1_ref,            # (NL, 1, D)
    w1_ref, b1_ref,             # (NL, D, FF), (NL, 1, FF)
    w2_ref, b2_ref,             # (NL, FF, D), (NL, 1, D)
    g2_ref, be2_ref,            # (NL, 1, D)
    hmask_ref,                  # (H*L, D)   head block-diag 0/1 mask
    rep_ref,                    # (D, L*D)   lane-replication matrix (0/1)
    fcw_ref, fcb_ref,           # (L*D, Np), (1, Np)
    emask_ref,                  # (L, L*D)   flatten block-diag 0/1 mask
    o_ref,                      # (1, 1, Np)
    *, num_heads, num_layers,
):
    H, NL = num_heads, num_layers
    D = proj_w_ref.shape[1]
    hd = D // H
    scale = 1.0 / float(hd) ** 0.5

    hmask = hmask_ref[...]                                          # (H*L, D)

    # ---- input projection for this batch element: (L, F) @ (F, D) + b ----
    h = (jnp.dot(x_ref[0], proj_w_ref[...],
                 preferred_element_type=jnp.float32)
         + proj_b_ref[...])                                         # (L, D)

    # ---- transformer blocks (unrolled; all layer weights are VMEM-resident).
    # TODO(synk): for production widths move the layer axis into an
    # "arbitrary" grid dimension so layer weights are streamed/double-buffered.
    for layer in range(NL):
        # fused QKV projection: ONE (L, D) @ (D, 3D) matmul
        qkv = (jnp.dot(h, wqkv_ref[layer],
                       preferred_element_type=jnp.float32)
               + bqkv_ref[layer])                                   # (L, 3D)
        q = qkv[:, 0:D]                                             # (L, D)
        k = qkv[:, D:2 * D]
        v = qkv[:, 2 * D:3 * D]

        # head-merged attention via block-diagonal row expansion:
        #   k_exp[h*L + j, c] = k[j, c] * (c // hd == h)   (same for v)
        k_exp = jnp.concatenate([k] * H, axis=0) * hmask            # (H*L, D)
        v_exp = jnp.concatenate([v] * H, axis=0) * hmask            # (H*L, D)

        # scores for ALL heads in one matmul: s[i, h*L+j] = q_h[i]·k_h[j]
        s = lax.dot_general(q, k_exp, (((1,), (1,)), ((), ())),
                            preferred_element_type=jnp.float32) * scale
        # subtracting the per-row (cross-head) max is a constant shift inside
        # every head block -> per-head softmax is unchanged, just stabilized
        s = s - jnp.max(s, axis=-1, keepdims=True)
        e = jnp.exp(s)                                              # (L, H*L)

        # un-normalized attended output (already head-concatenated along
        # lanes) and per-head softmax denominators, each via one wide matmul
        unnorm = jnp.dot(e, v_exp, preferred_element_type=jnp.float32)  # (L, D)
        denom = jnp.dot(e, hmask, preferred_element_type=jnp.float32)   # (L, D)
        att = unnorm / denom                                        # exact div

        att = (jnp.dot(att, wo_ref[layer],
                       preferred_element_type=jnp.float32)
               + bo_ref[layer])                                     # (L, D)

        # residual + norm1
        h1 = _layer_norm(att + h, g1_ref[layer], be1_ref[layer])

        # feedforward: ReLU(h1 @ W1 + b1) @ W2 + b2
        f = (jnp.dot(h1, w1_ref[layer],
                     preferred_element_type=jnp.float32) + b1_ref[layer])
        f = jnp.maximum(f, 0.0)
        f = (jnp.dot(f, w2_ref[layer],
                     preferred_element_type=jnp.float32) + b2_ref[layer])

        # residual + norm2
        h = _layer_norm(f + h1, g2_ref[layer], be2_ref[layer])

    # ---- flatten + final fc as two wide matmuls (no in-kernel reshape):
    #   h_rep[l, l'*D + d] = h[l, d]          (lane replication via matmul)
    #   h_exp = h_rep * emask                 (keep only the l == l' block)
    #   pre   = sum_l h_exp[l] @ fc_w + fc_b
    h_rep = jnp.dot(h, rep_ref[...], preferred_element_type=jnp.float32)
    pre_rows = jnp.dot(h_rep * emask_ref[...], fcw_ref[...],
                       preferred_element_type=jnp.float32)          # (L, Np)
    pre = jnp.sum(pre_rows, axis=0, keepdims=True) + fcb_ref[...]   # (1, Np)
    o_ref[0] = pre.astype(o_ref.dtype)                              # one store


# ----------------------------------------------------------------------------
# Wrapper: parameter packing + pallas_call
# ----------------------------------------------------------------------------

def transformer_forecast(x, params, num_heads):
    """Forward pass of TransformerTimeSeriesForecast.  x: (B, L, feature_dim)."""
    B, L, F = x.shape
    D = params["proj_w"].shape[1]
    H = num_heads
    hd = D // H
    layers = params["layers"]
    NL = len(layers)
    FF = layers[0]["w1"].shape[1]
    pre_len = params["fc_w"].shape[1]
    Np = _round_up(pre_len, 128)                 # lane-dense fc output width

    # --- pack per-layer parameters, stacked along a leading layer axis ---
    wqkv = jnp.stack(
        [jnp.concatenate([lp["wq"], lp["wk"], lp["wv"]], axis=1) for lp in layers], 0)
    bqkv = jnp.stack(
        [jnp.concatenate([lp["bq"], lp["bk"], lp["bv"]], axis=0).reshape(1, 3 * D)
         for lp in layers], 0)
    wo = jnp.stack([lp["wo"] for lp in layers], 0)
    bo = jnp.stack([lp["bo"].reshape(1, D) for lp in layers], 0)
    g1 = jnp.stack([lp["ln1_g"].reshape(1, D) for lp in layers], 0)
    be1 = jnp.stack([lp["ln1_b"].reshape(1, D) for lp in layers], 0)
    w1 = jnp.stack([lp["w1"] for lp in layers], 0)
    b1 = jnp.stack([lp["b1"].reshape(1, FF) for lp in layers], 0)
    w2 = jnp.stack([lp["w2"] for lp in layers], 0)
    b2 = jnp.stack([lp["b2"].reshape(1, D) for lp in layers], 0)
    g2 = jnp.stack([lp["ln2_g"].reshape(1, D) for lp in layers], 0)
    be2 = jnp.stack([lp["ln2_b"].reshape(1, D) for lp in layers], 0)

    # --- constant 0/1 matrices for head-merged attention and flatten-fc ---
    head_of_col = jnp.arange(D) // hd                       # (D,)
    head_of_row = jnp.arange(H * L) // L                    # (H*L,)
    hmask = (head_of_row[:, None] == head_of_col[None, :]).astype(jnp.float32)

    rep = (jnp.arange(D)[:, None] == (jnp.arange(L * D)[None, :] % D)
           ).astype(jnp.float32)                            # (D, L*D)
    emask = (jnp.arange(L)[:, None] == (jnp.arange(L * D)[None, :] // D)
             ).astype(jnp.float32)                          # (L, L*D)

    # lane-dense final fc (padded to Np, sliced back below)
    fc_w = jnp.pad(params["fc_w"], ((0, 0), (0, Np - pre_len)))     # (L*D, Np)
    fc_b = jnp.pad(params["fc_b"], (0, Np - pre_len)).reshape(1, Np)
    proj_b = params["proj_b"].reshape(1, D)

    kernel = functools.partial(
        _fused_forward_kernel, num_heads=H, num_layers=NL)

    def full(shape):
        # weight / constant operand: resident, same block every grid step
        zeros = (0,) * len(shape)
        return pl.BlockSpec(shape, lambda b: zeros)

    out = pl.pallas_call(
        kernel,
        out_shape=jax.ShapeDtypeStruct((B, 1, Np), jnp.float32),
        grid=(B,),
        in_specs=[
            pl.BlockSpec((1, L, F), lambda b: (b, 0, 0)),            # x
            full((F, D)), full((1, D)),                              # proj
            full((NL, D, 3 * D)), full((NL, 1, 3 * D)),              # qkv
            full((NL, D, D)), full((NL, 1, D)),                      # wo
            full((NL, 1, D)), full((NL, 1, D)),                      # ln1
            full((NL, D, FF)), full((NL, 1, FF)),                    # ffn fc1
            full((NL, FF, D)), full((NL, 1, D)),                     # ffn fc2
            full((NL, 1, D)), full((NL, 1, D)),                      # ln2
            full((H * L, D)),                                        # hmask
            full((D, L * D)),                                        # rep
            full((L * D, Np)), full((1, Np)),                        # fc
            full((L, L * D)),                                        # emask
        ],
        out_specs=pl.BlockSpec((1, 1, Np), lambda b: (b, 0, 0)),
        compiler_params=pltpu.CompilerParams(
            dimension_semantics=("parallel",)),
    )(x, params["proj_w"], proj_b,
      wqkv, bqkv, wo, bo, g1, be1, w1, b1, w2, b2, g2, be2,
      hmask, rep, fc_w, fc_b, emask)

    return out[:, 0, :pre_len]


# ----------------------------------------------------------------------------
# Pure-JAX reference (mirrors the torch forward, eval mode)
# ----------------------------------------------------------------------------

def reference_forward(x, params, num_heads):
    B, L, F = x.shape
    D = params["proj_w"].shape[1]
    hd = D // num_heads
    h = jnp.dot(x, params["proj_w"]) + params["proj_b"]
    for lp in params["layers"]:
        q = (jnp.dot(h, lp["wq"]) + lp["bq"]).reshape(B, L, num_heads, hd)
        k = (jnp.dot(h, lp["wk"]) + lp["bk"]).reshape(B, L, num_heads, hd)
        v = (jnp.dot(h, lp["wv"]) + lp["bv"]).reshape(B, L, num_heads, hd)
        s = jnp.einsum("bqhd,bkhd->bhqk", q, k) / hd ** 0.5
        p = jax.nn.softmax(s, axis=-1)
        att = jnp.einsum("bhqk,bkhd->bqhd", p, v).reshape(B, L, D)
        att = jnp.dot(att, lp["wo"]) + lp["bo"]
        h1 = _layer_norm(att + h, lp["ln1_g"], lp["ln1_b"])
        f = jnp.maximum(jnp.dot(h1, lp["w1"]) + lp["b1"], 0.0)
        f = jnp.dot(f, lp["w2"]) + lp["b2"]
        h = _layer_norm(f + h1, lp["ln2_g"], lp["ln2_b"])
    flat = h.reshape(B, L * D)
    return jnp.dot(flat, params["fc_w"]) + params["fc_b"]


# ----------------------------------------------------------------------------
# Parameter init (mirrors the torch module's parameter structure)
# ----------------------------------------------------------------------------

def init_params(key, feature_dim, hidden_dim, num_heads, num_layers,
                expansion, data_len, pre_len):
    def lin(key, in_dim, out_dim):
        kw, kb = jax.random.split(key)
        w = jax.random.normal(kw, (in_dim, out_dim), jnp.float32) * 0.05
        b = jax.random.normal(kb, (out_dim,), jnp.float32) * 0.05
        return w, b

    keys = jax.random.split(key, num_layers + 2)
    params = {}
    params["proj_w"], params["proj_b"] = lin(keys[0], feature_dim, hidden_dim)
    params["fc_w"], params["fc_b"] = lin(keys[1], data_len * hidden_dim, pre_len)

    ffn_hidden = int(hidden_dim * expansion)
    layers = []
    for i in range(num_layers):
        lk = jax.random.split(keys[2 + i], 6)
        lp = {}
        lp["wq"], lp["bq"] = lin(lk[0], hidden_dim, hidden_dim)
        lp["wk"], lp["bk"] = lin(lk[1], hidden_dim, hidden_dim)
        lp["wv"], lp["bv"] = lin(lk[2], hidden_dim, hidden_dim)
        lp["wo"], lp["bo"] = lin(lk[3], hidden_dim, hidden_dim)
        lp["w1"], lp["b1"] = lin(lk[4], hidden_dim, ffn_hidden)
        lp["w2"], lp["b2"] = lin(lk[5], ffn_hidden, hidden_dim)
        lp["ln1_g"] = jnp.ones((hidden_dim,), jnp.float32)
        lp["ln1_b"] = jnp.zeros((hidden_dim,), jnp.float32)
        lp["ln2_g"] = jnp.ones((hidden_dim,), jnp.float32)
        lp["ln2_b"] = jnp.zeros((hidden_dim,), jnp.float32)
        layers.append(lp)
    params["layers"] = layers
    return params


# ----------------------------------------------------------------------------
# Main
# ----------------------------------------------------------------------------

if __name__ == "__main__":
    batch = 2
    data_len = 8          # sequence length
    feature_dim = 4
    hidden_dim = 32
    num_heads = 4
    num_layers = 2
    expansion = 4
    pre_len = 4

    key = jax.random.PRNGKey(0)
    kx, kp = jax.random.split(key)
    x = jax.random.normal(kx, (batch, data_len, feature_dim), jnp.float32)

    params = init_params(kp, feature_dim, hidden_dim, num_heads, num_layers,
                         expansion, data_len, pre_len)

    fwd = jax.jit(lambda x_, p_: transformer_forecast(x_, p_, num_heads))
    out = jax.block_until_ready(fwd(x, params))
    assert out.shape == (batch, pre_len), out.shape

    # semantic sanity check against the pure-JAX reference (loose fp tolerance)
    with jax.default_matmul_precision("float32"):
        ref = reference_forward(x, params, num_heads)
    assert jnp.allclose(out, ref, rtol=1e-2, atol=1e-2), \
        float(jnp.max(jnp.abs(out - ref)))

    print("KERNEL_OK")
</pallas_src>

<mosaic_0001>
module attributes {stable_mosaic.version = 11 : i64} {
  func.func @_fused_forward_kernel(%arg0: i32, %arg1: memref<1x8x4xf32, #tpu.memory_space<vmem>>, %arg2: memref<4x32xf32, #tpu.memory_space<vmem>>, %arg3: memref<1x32xf32, #tpu.memory_space<vmem>>, %arg4: memref<2x32x96xf32, #tpu.memory_space<vmem>>, %arg5: memref<2x1x96xf32, #tpu.memory_space<vmem>>, %arg6: memref<2x32x32xf32, #tpu.memory_space<vmem>>, %arg7: memref<2x1x32xf32, #tpu.memory_space<vmem>>, %arg8: memref<2x1x32xf32, #tpu.memory_space<vmem>>, %arg9: memref<2x1x32xf32, #tpu.memory_space<vmem>>, %arg10: memref<2x32x128xf32, #tpu.memory_space<vmem>>, %arg11: memref<2x1x128xf32, #tpu.memory_space<vmem>>, %arg12: memref<2x128x32xf32, #tpu.memory_space<vmem>>, %arg13: memref<2x1x32xf32, #tpu.memory_space<vmem>>, %arg14: memref<2x1x32xf32, #tpu.memory_space<vmem>>, %arg15: memref<2x1x32xf32, #tpu.memory_space<vmem>>, %arg16: memref<32x32xf32, #tpu.memory_space<vmem>>, %arg17: memref<32x256xf32, #tpu.memory_space<vmem>>, %arg18: memref<256x128xf32, #tpu.memory_space<vmem>>, %arg19: memref<1x128xf32, #tpu.memory_space<vmem>>, %arg20: memref<8x256xf32, #tpu.memory_space<vmem>>, %arg21: memref<1x1x128xf32, #tpu.memory_space<vmem>>) attributes {dimension_semantics = [#tpu.dimension_semantics<parallel>], iteration_bounds = array<i64: 2>, scalar_prefetch = 0 : i64, scratch_operands = 0 : i64, tpu.core_type = #tpu.core_type<tc>, window_params = [{transform_indices = @transform_0, window_bounds = array<i64: 1, 8, 4>}, {pipeline_mode = #tpu.pipeline_mode<synchronous>, transform_indices = @transform_1, window_bounds = array<i64: 4, 32>}, {pipeline_mode = #tpu.pipeline_mode<synchronous>, transform_indices = @transform_2, window_bounds = array<i64: 1, 32>}, {pipeline_mode = #tpu.pipeline_mode<synchronous>, transform_indices = @transform_3, window_bounds = array<i64: 2, 32, 96>}, {pipeline_mode = #tpu.pipeline_mode<synchronous>, transform_indices = @transform_4, window_bounds = array<i64: 2, 1, 96>}, {pipeline_mode = #tpu.pipeline_mode<synchronous>, transform_indices = @transform_5, window_bounds = array<i64: 2, 32, 32>}, {pipeline_mode = #tpu.pipeline_mode<synchronous>, transform_indices = @transform_6, window_bounds = array<i64: 2, 1, 32>}, {pipeline_mode = #tpu.pipeline_mode<synchronous>, transform_indices = @transform_7, window_bounds = array<i64: 2, 1, 32>}, {pipeline_mode = #tpu.pipeline_mode<synchronous>, transform_indices = @transform_8, window_bounds = array<i64: 2, 1, 32>}, {pipeline_mode = #tpu.pipeline_mode<synchronous>, transform_indices = @transform_9, window_bounds = array<i64: 2, 32, 128>}, {pipeline_mode = #tpu.pipeline_mode<synchronous>, transform_indices = @transform_10, window_bounds = array<i64: 2, 1, 128>}, {pipeline_mode = #tpu.pipeline_mode<synchronous>, transform_indices = @transform_11, window_bounds = array<i64: 2, 128, 32>}, {pipeline_mode = #tpu.pipeline_mode<synchronous>, transform_indices = @transform_12, window_bounds = array<i64: 2, 1, 32>}, {pipeline_mode = #tpu.pipeline_mode<synchronous>, transform_indices = @transform_13, window_bounds = array<i64: 2, 1, 32>}, {pipeline_mode = #tpu.pipeline_mode<synchronous>, transform_indices = @transform_14, window_bounds = array<i64: 2, 1, 32>}, {pipeline_mode = #tpu.pipeline_mode<synchronous>, transform_indices = @transform_15, window_bounds = array<i64: 32, 32>}, {pipeline_mode = #tpu.pipeline_mode<synchronous>, transform_indices = @transform_16, window_bounds = array<i64: 32, 256>}, {pipeline_mode = #tpu.pipeline_mode<synchronous>, transform_indices = @transform_17, window_bounds = array<i64: 256, 128>}, {pipeline_mode = #tpu.pipeline_mode<synchronous>, transform_indices = @transform_18, window_bounds = array<i64: 1, 128>}, {pipeline_mode = #tpu.pipeline_mode<synchronous>, transform_indices = @transform_19, window_bounds = array<i64: 8, 256>}, {transform_indices = @transform_20, window_bounds = array<i64: 1, 1, 128>}]} {
    %c0 = arith.constant 0 : index
    %c0_0 = arith.constant 0 : index
    %0 = vector.load %arg16[%c0, %c0_0] : memref<32x32xf32, #tpu.memory_space<vmem>>, vector<32x32xf32>
    %c0_1 = arith.constant 0 : index
    %c0_2 = arith.constant 0 : index
    %c0_3 = arith.constant 0 : index
    %1 = vector.load %arg1[%c0_1, %c0_2, %c0_3] : memref<1x8x4xf32, #tpu.memory_space<vmem>>, vector<1x8x4xf32>
    %2 = vector.shape_cast %1 : vector<1x8x4xf32> to vector<8x4xf32>
    %c0_4 = arith.constant 0 : index
    %c0_5 = arith.constant 0 : index
    %3 = vector.load %arg2[%c0_4, %c0_5] : memref<4x32xf32, #tpu.memory_space<vmem>>, vector<4x32xf32>
    %cst = arith.constant dense<0.000000e+00> : vector<8x32xf32>
    %4 = tpu.matmul %2, %3, %cst {dimension_numbers = #tpu.dot_dimension_numbers<[1], [0], [0], [1], [0, 0, 1, 1], [], []>} : vector<8x4xf32>, vector<4x32xf32>, vector<8x32xf32> -> vector<8x32xf32>
    %c0_6 = arith.constant 0 : index
    %c0_7 = arith.constant 0 : index
    %5 = vector.load %arg3[%c0_6, %c0_7] : memref<1x32xf32, #tpu.memory_space<vmem>>, vector<1x32xf32>
    %6 = vector.broadcast %5 : vector<1x32xf32> to vector<8x32xf32>
    %7 = arith.addf %4, %6 : vector<8x32xf32>
    %c0_8 = arith.constant 0 : index
    %c0_9 = arith.constant 0 : index
    %c0_10 = arith.constant 0 : index
    %8 = vector.load %arg4[%c0_8, %c0_9, %c0_10] : memref<2x32x96xf32, #tpu.memory_space<vmem>>, vector<1x32x96xf32>
    %9 = vector.shape_cast %8 : vector<1x32x96xf32> to vector<32x96xf32>
    %cst_11 = arith.constant dense<0.000000e+00> : vector<8x96xf32>
    %10 = tpu.matmul %7, %9, %cst_11 {dimension_numbers = #tpu.dot_dimension_numbers<[1], [0], [0], [1], [0, 0, 1, 1], [], []>} : vector<8x32xf32>, vector<32x96xf32>, vector<8x96xf32> -> vector<8x96xf32>
    %c0_12 = arith.constant 0 : index
    %c0_13 = arith.constant 0 : index
    %c0_14 = arith.constant 0 : index
    %11 = vector.load %arg5[%c0_12, %c0_13, %c0_14] : memref<2x1x96xf32, #tpu.memory_space<vmem>>, vector<1x1x96xf32>
    %12 = vector.shape_cast %11 : vector<1x1x96xf32> to vector<1x96xf32>
    %13 = vector.broadcast %12 : vector<1x96xf32> to vector<8x96xf32>
    %14 = arith.addf %10, %13 : vector<8x96xf32>
    %15 = vector.extract_strided_slice %14 {offsets = [0, 0], sizes = [8, 32], strides = [1, 1]} : vector<8x96xf32> to vector<8x32xf32>
    %16 = vector.extract_strided_slice %14 {offsets = [0, 32], sizes = [8, 32], strides = [1, 1]} : vector<8x96xf32> to vector<8x32xf32>
    %17 = vector.extract_strided_slice %14 {offsets = [0, 64], sizes = [8, 32], strides = [1, 1]} : vector<8x96xf32> to vector<8x32xf32>
    %18 = tpu.concatenate %16, %16, %16, %16 in 0 : vector<8x32xf32>, vector<8x32xf32>, vector<8x32xf32>, vector<8x32xf32> -> vector<32x32xf32>
    %19 = arith.mulf %18, %0 : vector<32x32xf32>
    %20 = tpu.concatenate %17, %17, %17, %17 in 0 : vector<8x32xf32>, vector<8x32xf32>, vector<8x32xf32>, vector<8x32xf32> -> vector<32x32xf32>
    %21 = arith.mulf %20, %0 : vector<32x32xf32>
    %cst_15 = arith.constant dense<0.000000e+00> : vector<8x32xf32>
    %22 = tpu.matmul %15, %19, %cst_15 {dimension_numbers = #tpu.dot_dimension_numbers<[1], [1], [0], [0], [0, 0, 1, 0], [], []>} : vector<8x32xf32>, vector<32x32xf32>, vector<8x32xf32> -> vector<8x32xf32>
    %cst_16 = arith.constant 0.353553385 : f32
    %23 = vector.broadcast %cst_16 : f32 to vector<8x32xf32>
    %24 = arith.mulf %22, %23 : vector<8x32xf32>
    %cst_17 = arith.constant dense<0xFF800000> : vector<8xf32>
    %25 = vector.multi_reduction <maximumf>, %24, %cst_17 [1] : vector<8x32xf32> to vector<8xf32>
    %26 = vector.shape_cast %25 : vector<8xf32> to vector<8x1xf32>
    %27 = vector.broadcast %26 : vector<8x1xf32> to vector<8x32xf32>
    %28 = arith.subf %24, %27 : vector<8x32xf32>
    %29 = math.exp %28 : vector<8x32xf32>
    %cst_18 = arith.constant dense<0.000000e+00> : vector<8x32xf32>
    %30 = tpu.matmul %29, %21, %cst_18 {dimension_numbers = #tpu.dot_dimension_numbers<[1], [0], [0], [1], [0, 0, 1, 1], [], []>} : vector<8x32xf32>, vector<32x32xf32>, vector<8x32xf32> -> vector<8x32xf32>
    %cst_19 = arith.constant dense<0.000000e+00> : vector<8x32xf32>
    %31 = tpu.matmul %29, %0, %cst_19 {dimension_numbers = #tpu.dot_dimension_numbers<[1], [0], [0], [1], [0, 0, 1, 1], [], []>} : vector<8x32xf32>, vector<32x32xf32>, vector<8x32xf32> -> vector<8x32xf32>
    %32 = arith.divf %30, %31 : vector<8x32xf32>
    %c0_20 = arith.constant 0 : index
    %c0_21 = arith.constant 0 : index
    %c0_22 = arith.constant 0 : index
    %33 = vector.load %arg6[%c0_20, %c0_21, %c0_22] : memref<2x32x32xf32, #tpu.memory_space<vmem>>, vector<1x32x32xf32>
    %34 = vector.shape_cast %33 : vector<1x32x32xf32> to vector<32x32xf32>
    %cst_23 = arith.constant dense<0.000000e+00> : vector<8x32xf32>
    %35 = tpu.matmul %32, %34, %cst_23 {dimension_numbers = #tpu.dot_dimension_numbers<[1], [0], [0], [1], [0, 0, 1, 1], [], []>} : vector<8x32xf32>, vector<32x32xf32>, vector<8x32xf32> -> vector<8x32xf32>
    %c0_24 = arith.constant 0 : index
    %c0_25 = arith.constant 0 : index
    %c0_26 = arith.constant 0 : index
    %36 = vector.load %arg7[%c0_24, %c0_25, %c0_26] : memref<2x1x32xf32, #tpu.memory_space<vmem>>, vector<1x1x32xf32>
    %37 = vector.shape_cast %36 : vector<1x1x32xf32> to vector<1x32xf32>
    %38 = vector.broadcast %37 : vector<1x32xf32> to vector<8x32xf32>
    %39 = arith.addf %35, %38 : vector<8x32xf32>
    %40 = arith.addf %39, %7 : vector<8x32xf32>
    %c0_27 = arith.constant 0 : index
    %c0_28 = arith.constant 0 : index
    %c0_29 = arith.constant 0 : index
    %41 = vector.load %arg8[%c0_27, %c0_28, %c0_29] : memref<2x1x32xf32, #tpu.memory_space<vmem>>, vector<1x1x32xf32>
    %42 = vector.shape_cast %41 : vector<1x1x32xf32> to vector<1x32xf32>
    %c0_30 = arith.constant 0 : index
    %c0_31 = arith.constant 0 : index
    %c0_32 = arith.constant 0 : index
    %43 = vector.load %arg9[%c0_30, %c0_31, %c0_32] : memref<2x1x32xf32, #tpu.memory_space<vmem>>, vector<1x1x32xf32>
    %44 = vector.shape_cast %43 : vector<1x1x32xf32> to vector<1x32xf32>
    %cst_33 = arith.constant dense<0.000000e+00> : vector<8xf32>
    %45 = vector.multi_reduction <add>, %40, %cst_33 [1] : vector<8x32xf32> to vector<8xf32>
    %46 = vector.shape_cast %45 : vector<8xf32> to vector<8x1xf32>
    %cst_34 = arith.constant 3.200000e+01 : f32
    %47 = vector.broadcast %cst_34 : f32 to vector<8x1xf32>
    %48 = arith.divf %46, %47 : vector<8x1xf32>
    %49 = vector.broadcast %48 : vector<8x1xf32> to vector<8x32xf32>
    %50 = arith.subf %40, %49 : vector<8x32xf32>
    %51 = arith.mulf %50, %50 : vector<8x32xf32>
    %cst_35 = arith.constant dense<0.000000e+00> : vector<8xf32>
    %52 = vector.multi_reduction <add>, %51, %cst_35 [1] : vector<8x32xf32> to vector<8xf32>
    %53 = vector.shape_cast %52 : vector<8xf32> to vector<8x1xf32>
    %cst_36 = arith.constant 3.200000e+01 : f32
    %54 = vector.broadcast %cst_36 : f32 to vector<8x1xf32>
    %55 = arith.divf %53, %54 : vector<8x1xf32>
    %56 = vector.broadcast %48 : vector<8x1xf32> to vector<8x32xf32>
    %57 = arith.subf %40, %56 : vector<8x32xf32>
    %cst_37 = arith.constant 9.99999974E-6 : f32
    %58 = vector.broadcast %cst_37 : f32 to vector<8x1xf32>
    %59 = arith.addf %55, %58 : vector<8x1xf32>
    %60 = math.rsqrt %59 : vector<8x1xf32>
    %61 = vector.broadcast %60 : vector<8x1xf32> to vector<8x32xf32>
    %62 = arith.mulf %57, %61 : vector<8x32xf32>
    %63 = vector.broadcast %42 : vector<1x32xf32> to vector<8x32xf32>
    %64 = arith.mulf %62, %63 : vector<8x32xf32>
    %65 = vector.broadcast %44 : vector<1x32xf32> to vector<8x32xf32>
    %66 = arith.addf %64, %65 : vector<8x32xf32>
    %c0_38 = arith.constant 0 : index
    %c0_39 = arith.constant 0 : index
    %c0_40 = arith.constant 0 : index
    %67 = vector.load %arg10[%c0_38, %c0_39, %c0_40] : memref<2x32x128xf32, #tpu.memory_space<vmem>>, vector<1x32x128xf32>
    %68 = vector.shape_cast %67 : vector<1x32x128xf32> to vector<32x128xf32>
    %cst_41 = arith.constant dense<0.000000e+00> : vector<8x128xf32>
    %69 = tpu.matmul %66, %68, %cst_41 {dimension_numbers = #tpu.dot_dimension_numbers<[1], [0], [0], [1], [0, 0, 1, 1], [], []>} : vector<8x32xf32>, vector<32x128xf32>, vector<8x128xf32> -> vector<8x128xf32>
    %c0_42 = arith.constant 0 : index
    %c0_43 = arith.constant 0 : index
    %c0_44 = arith.constant 0 : index
    %70 = vector.load %arg11[%c0_42, %c0_43, %c0_44] : memref<2x1x128xf32, #tpu.memory_space<vmem>>, vector<1x1x128xf32>
    %71 = vector.shape_cast %70 : vector<1x1x128xf32> to vector<1x128xf32>
    %72 = vector.broadcast %71 : vector<1x128xf32> to vector<8x128xf32>
    %73 = arith.addf %69, %72 : vector<8x128xf32>
    %cst_45 = arith.constant 0.000000e+00 : f32
    %74 = vector.broadcast %cst_45 : f32 to vector<8x128xf32>
    %75 = arith.maximumf %73, %74 : vector<8x128xf32>
    %c0_46 = arith.constant 0 : index
    %c0_47 = arith.constant 0 : index
    %c0_48 = arith.constant 0 : index
    %76 = vector.load %arg12[%c0_46, %c0_47, %c0_48] : memref<2x128x32xf32, #tpu.memory_space<vmem>>, vector<1x128x32xf32>
    %77 = vector.shape_cast %76 : vector<1x128x32xf32> to vector<128x32xf32>
    %cst_49 = arith.constant dense<0.000000e+00> : vector<8x32xf32>
    %78 = tpu.matmul %75, %77, %cst_49 {dimension_numbers = #tpu.dot_dimension_numbers<[1], [0], [0], [1], [0, 0, 1, 1], [], []>} : vector<8x128xf32>, vector<128x32xf32>, vector<8x32xf32> -> vector<8x32xf32>
    %c0_50 = arith.constant 0 : index
    %c0_51 = arith.constant 0 : index
    %c0_52 = arith.constant 0 : index
    %79 = vector.load %arg13[%c0_50, %c0_51, %c0_52] : memref<2x1x32xf32, #tpu.memory_space<vmem>>, vector<1x1x32xf32>
    %80 = vector.shape_cast %79 : vector<1x1x32xf32> to vector<1x32xf32>
    %81 = vector.broadcast %80 : vector<1x32xf32> to vector<8x32xf32>
    %82 = arith.addf %78, %81 : vector<8x32xf32>
    %83 = arith.addf %82, %66 : vector<8x32xf32>
    %c0_53 = arith.constant 0 : index
    %c0_54 = arith.constant 0 : index
    %c0_55 = arith.constant 0 : index
    %84 = vector.load %arg14[%c0_53, %c0_54, %c0_55] : memref<2x1x32xf32, #tpu.memory_space<vmem>>, vector<1x1x32xf32>
    %85 = vector.shape_cast %84 : vector<1x1x32xf32> to vector<1x32xf32>
    %c0_56 = arith.constant 0 : index
    %c0_57 = arith.constant 0 : index
    %c0_58 = arith.constant 0 : index
    %86 = vector.load %arg15[%c0_56, %c0_57, %c0_58] : memref<2x1x32xf32, #tpu.memory_space<vmem>>, vector<1x1x32xf32>
    %87 = vector.shape_cast %86 : vector<1x1x32xf32> to vector<1x32xf32>
    %cst_59 = arith.constant dense<0.000000e+00> : vector<8xf32>
    %88 = vector.multi_reduction <add>, %83, %cst_59 [1] : vector<8x32xf32> to vector<8xf32>
    %89 = vector.shape_cast %88 : vector<8xf32> to vector<8x1xf32>
    %cst_60 = arith.constant 3.200000e+01 : f32
    %90 = vector.broadcast %cst_60 : f32 to vector<8x1xf32>
    %91 = arith.divf %89, %90 : vector<8x1xf32>
    %92 = vector.broadcast %91 : vector<8x1xf32> to vector<8x32xf32>
    %93 = arith.subf %83, %92 : vector<8x32xf32>
    %94 = arith.mulf %93, %93 : vector<8x32xf32>
    %cst_61 = arith.constant dense<0.000000e+00> : vector<8xf32>
    %95 = vector.multi_reduction <add>, %94, %cst_61 [1] : vector<8x32xf32> to vector<8xf32>
    %96 = vector.shape_cast %95 : vector<8xf32> to vector<8x1xf32>
    %cst_62 = arith.constant 3.200000e+01 : f32
    %97 = vector.broadcast %cst_62 : f32 to vector<8x1xf32>
    %98 = arith.divf %96, %97 : vector<8x1xf32>
    %99 = vector.broadcast %91 : vector<8x1xf32> to vector<8x32xf32>
    %100 = arith.subf %83, %99 : vector<8x32xf32>
    %cst_63 = arith.constant 9.99999974E-6 : f32
    %101 = vector.broadcast %cst_63 : f32 to vector<8x1xf32>
    %102 = arith.addf %98, %101 : vector<8x1xf32>
    %103 = math.rsqrt %102 : vector<8x1xf32>
    %104 = vector.broadcast %103 : vector<8x1xf32> to vector<8x32xf32>
    %105 = arith.mulf %100, %104 : vector<8x32xf32>
    %106 = vector.broadcast %85 : vector<1x32xf32> to vector<8x32xf32>
    %107 = arith.mulf %105, %106 : vector<8x32xf32>
    %108 = vector.broadcast %87 : vector<1x32xf32> to vector<8x32xf32>
    %109 = arith.addf %107, %108 : vector<8x32xf32>
    %c1 = arith.constant 1 : index
    %c0_64 = arith.constant 0 : index
    %c0_65 = arith.constant 0 : index
    %110 = vector.load %arg4[%c1, %c0_64, %c0_65] : memref<2x32x96xf32, #tpu.memory_space<vmem>>, vector<1x32x96xf32>
    %111 = vector.shape_cast %110 : vector<1x32x96xf32> to vector<32x96xf32>
    %cst_66 = arith.constant dense<0.000000e+00> : vector<8x96xf32>
    %112 = tpu.matmul %109, %111, %cst_66 {dimension_numbers = #tpu.dot_dimension_numbers<[1], [0], [0], [1], [0, 0, 1, 1], [], []>} : vector<8x32xf32>, vector<32x96xf32>, vector<8x96xf32> -> vector<8x96xf32>
    %c1_67 = arith.constant 1 : index
    %c0_68 = arith.constant 0 : index
    %c0_69 = arith.constant 0 : index
    %113 = vector.load %arg5[%c1_67, %c0_68, %c0_69] : memref<2x1x96xf32, #tpu.memory_space<vmem>>, vector<1x1x96xf32>
    %114 = vector.shape_cast %113 : vector<1x1x96xf32> to vector<1x96xf32>
    %115 = vector.broadcast %114 : vector<1x96xf32> to vector<8x96xf32>
    %116 = arith.addf %112, %115 : vector<8x96xf32>
    %117 = vector.extract_strided_slice %116 {offsets = [0, 0], sizes = [8, 32], strides = [1, 1]} : vector<8x96xf32> to vector<8x32xf32>
    %118 = vector.extract_strided_slice %116 {offsets = [0, 32], sizes = [8, 32], strides = [1, 1]} : vector<8x96xf32> to vector<8x32xf32>
    %119 = vector.extract_strided_slice %116 {offsets = [0, 64], sizes = [8, 32], strides = [1, 1]} : vector<8x96xf32> to vector<8x32xf32>
    %120 = tpu.concatenate %118, %118, %118, %118 in 0 : vector<8x32xf32>, vector<8x32xf32>, vector<8x32xf32>, vector<8x32xf32> -> vector<32x32xf32>
    %121 = arith.mulf %120, %0 : vector<32x32xf32>
    %122 = tpu.concatenate %119, %119, %119, %119 in 0 : vector<8x32xf32>, vector<8x32xf32>, vector<8x32xf32>, vector<8x32xf32> -> vector<32x32xf32>
    %123 = arith.mulf %122, %0 : vector<32x32xf32>
    %cst_70 = arith.constant dense<0.000000e+00> : vector<8x32xf32>
    %124 = tpu.matmul %117, %121, %cst_70 {dimension_numbers = #tpu.dot_dimension_numbers<[1], [1], [0], [0], [0, 0, 1, 0], [], []>} : vector<8x32xf32>, vector<32x32xf32>, vector<8x32xf32> -> vector<8x32xf32>
    %cst_71 = arith.constant 0.353553385 : f32
    %125 = vector.broadcast %cst_71 : f32 to vector<8x32xf32>
    %126 = arith.mulf %124, %125 : vector<8x32xf32>
    %cst_72 = arith.constant dense<0xFF800000> : vector<8xf32>
    %127 = vector.multi_reduction <maximumf>, %126, %cst_72 [1] : vector<8x32xf32> to vector<8xf32>
    %128 = vector.shape_cast %127 : vector<8xf32> to vector<8x1xf32>
    %129 = vector.broadcast %128 : vector<8x1xf32> to vector<8x32xf32>
    %130 = arith.subf %126, %129 : vector<8x32xf32>
    %131 = math.exp %130 : vector<8x32xf32>
    %cst_73 = arith.constant dense<0.000000e+00> : vector<8x32xf32>
    %132 = tpu.matmul %131, %123, %cst_73 {dimension_numbers = #tpu.dot_dimension_numbers<[1], [0], [0], [1], [0, 0, 1, 1], [], []>} : vector<8x32xf32>, vector<32x32xf32>, vector<8x32xf32> -> vector<8x32xf32>
    %cst_74 = arith.constant dense<0.000000e+00> : vector<8x32xf32>
    %133 = tpu.matmul %131, %0, %cst_74 {dimension_numbers = #tpu.dot_dimension_numbers<[1], [0], [0], [1], [0, 0, 1, 1], [], []>} : vector<8x32xf32>, vector<32x32xf32>, vector<8x32xf32> -> vector<8x32xf32>
    %134 = arith.divf %132, %133 : vector<8x32xf32>
    %c1_75 = arith.constant 1 : index
    %c0_76 = arith.constant 0 : index
    %c0_77 = arith.constant 0 : index
    %135 = vector.load %arg6[%c1_75, %c0_76, %c0_77] : memref<2x32x32xf32, #tpu.memory_space<vmem>>, vector<1x32x32xf32>
    %136 = vector.shape_cast %135 : vector<1x32x32xf32> to vector<32x32xf32>
    %cst_78 = arith.constant dense<0.000000e+00> : vector<8x32xf32>
    %137 = tpu.matmul %134, %136, %cst_78 {dimension_numbers = #tpu.dot_dimension_numbers<[1], [0], [0], [1], [0, 0, 1, 1], [], []>} : vector<8x32xf32>, vector<32x32xf32>, vector<8x32xf32> -> vector<8x32xf32>
    %c1_79 = arith.constant 1 : index
    %c0_80 = arith.constant 0 : index
    %c0_81 = arith.constant 0 : index
    %138 = vector.load %arg7[%c1_79, %c0_80, %c0_81] : memref<2x1x32xf32, #tpu.memory_space<vmem>>, vector<1x1x32xf32>
    %139 = vector.shape_cast %138 : vector<1x1x32xf32> to vector<1x32xf32>
    %140 = vector.broadcast %139 : vector<1x32xf32> to vector<8x32xf32>
    %141 = arith.addf %137, %140 : vector<8x32xf32>
    %142 = arith.addf %141, %109 : vector<8x32xf32>
    %c1_82 = arith.constant 1 : index
    %c0_83 = arith.constant 0 : index
    %c0_84 = arith.constant 0 : index
    %143 = vector.load %arg8[%c1_82, %c0_83, %c0_84] : memref<2x1x32xf32, #tpu.memory_space<vmem>>, vector<1x1x32xf32>
    %144 = vector.shape_cast %143 : vector<1x1x32xf32> to vector<1x32xf32>
    %c1_85 = arith.constant 1 : index
    %c0_86 = arith.constant 0 : index
    %c0_87 = arith.constant 0 : index
    %145 = vector.load %arg9[%c1_85, %c0_86, %c0_87] : memref<2x1x32xf32, #tpu.memory_space<vmem>>, vector<1x1x32xf32>
    %146 = vector.shape_cast %145 : vector<1x1x32xf32> to vector<1x32xf32>
    %cst_88 = arith.constant dense<0.000000e+00> : vector<8xf32>
    %147 = vector.multi_reduction <add>, %142, %cst_88 [1] : vector<8x32xf32> to vector<8xf32>
    %148 = vector.shape_cast %147 : vector<8xf32> to vector<8x1xf32>
    %cst_89 = arith.constant 3.200000e+01 : f32
    %149 = vector.broadcast %cst_89 : f32 to vector<8x1xf32>
    %150 = arith.divf %148, %149 : vector<8x1xf32>
    %151 = vector.broadcast %150 : vector<8x1xf32> to vector<8x32xf32>
    %152 = arith.subf %142, %151 : vector<8x32xf32>
    %153 = arith.mulf %152, %152 : vector<8x32xf32>
    %cst_90 = arith.constant dense<0.000000e+00> : vector<8xf32>
    %154 = vector.multi_reduction <add>, %153, %cst_90 [1] : vector<8x32xf32> to vector<8xf32>
    %155 = vector.shape_cast %154 : vector<8xf32> to vector<8x1xf32>
    %cst_91 = arith.constant 3.200000e+01 : f32
    %156 = vector.broadcast %cst_91 : f32 to vector<8x1xf32>
    %157 = arith.divf %155, %156 : vector<8x1xf32>
    %158 = vector.broadcast %150 : vector<8x1xf32> to vector<8x32xf32>
    %159 = arith.subf %142, %158 : vector<8x32xf32>
    %cst_92 = arith.constant 9.99999974E-6 : f32
    %160 = vector.broadcast %cst_92 : f32 to vector<8x1xf32>
    %161 = arith.addf %157, %160 : vector<8x1xf32>
    %162 = math.rsqrt %161 : vector<8x1xf32>
    %163 = vector.broadcast %162 : vector<8x1xf32> to vector<8x32xf32>
    %164 = arith.mulf %159, %163 : vector<8x32xf32>
    %165 = vector.broadcast %144 : vector<1x32xf32> to vector<8x32xf32>
    %166 = arith.mulf %164, %165 : vector<8x32xf32>
    %167 = vector.broadcast %146 : vector<1x32xf32> to vector<8x32xf32>
    %168 = arith.addf %166, %167 : vector<8x32xf32>
    %c1_93 = arith.constant 1 : index
    %c0_94 = arith.constant 0 : index
    %c0_95 = arith.constant 0 : index
    %169 = vector.load %arg10[%c1_93, %c0_94, %c0_95] : memref<2x32x128xf32, #tpu.memory_space<vmem>>, vector<1x32x128xf32>
    %170 = vector.shape_cast %169 : vector<1x32x128xf32> to vector<32x128xf32>
    %cst_96 = arith.constant dense<0.000000e+00> : vector<8x128xf32>
    %171 = tpu.matmul %168, %170, %cst_96 {dimension_numbers = #tpu.dot_dimension_numbers<[1], [0], [0], [1], [0, 0, 1, 1], [], []>} : vector<8x32xf32>, vector<32x128xf32>, vector<8x128xf32> -> vector<8x128xf32>
    %c1_97 = arith.constant 1 : index
    %c0_98 = arith.constant 0 : index
    %c0_99 = arith.constant 0 : index
    %172 = vector.load %arg11[%c1_97, %c0_98, %c0_99] : memref<2x1x128xf32, #tpu.memory_space<vmem>>, vector<1x1x128xf32>
    %173 = vector.shape_cast %172 : vector<1x1x128xf32> to vector<1x128xf32>
    %174 = vector.broadcast %173 : vector<1x128xf32> to vector<8x128xf32>
    %175 = arith.addf %171, %174 : vector<8x128xf32>
    %cst_100 = arith.constant 0.000000e+00 : f32
    %176 = vector.broadcast %cst_100 : f32 to vector<8x128xf32>
    %177 = arith.maximumf %175, %176 : vector<8x128xf32>
    %c1_101 = arith.constant 1 : index
    %c0_102 = arith.constant 0 : index
    %c0_103 = arith.constant 0 : index
    %178 = vector.load %arg12[%c1_101, %c0_102, %c0_103] : memref<2x128x32xf32, #tpu.memory_space<vmem>>, vector<1x128x32xf32>
    %179 = vector.shape_cast %178 : vector<1x128x32xf32> to vector<128x32xf32>
    %cst_104 = arith.constant dense<0.000000e+00> : vector<8x32xf32>
    %180 = tpu.matmul %177, %179, %cst_104 {dimension_numbers = #tpu.dot_dimension_numbers<[1], [0], [0], [1], [0, 0, 1, 1], [], []>} : vector<8x128xf32>, vector<128x32xf32>, vector<8x32xf32> -> vector<8x32xf32>
    %c1_105 = arith.constant 1 : index
    %c0_106 = arith.constant 0 : index
    %c0_107 = arith.constant 0 : index
    %181 = vector.load %arg13[%c1_105, %c0_106, %c0_107] : memref<2x1x32xf32, #tpu.memory_space<vmem>>, vector<1x1x32xf32>
    %182 = vector.shape_cast %181 : vector<1x1x32xf32> to vector<1x32xf32>
    %183 = vector.broadcast %182 : vector<1x32xf32> to vector<8x32xf32>
    %184 = arith.addf %180, %183 : vector<8x32xf32>
    %185 = arith.addf %184, %168 : vector<8x32xf32>
    %c1_108 = arith.constant 1 : index
    %c0_109 = arith.constant 0 : index
    %c0_110 = arith.constant 0 : index
    %186 = vector.load %arg14[%c1_108, %c0_109, %c0_110] : memref<2x1x32xf32, #tpu.memory_space<vmem>>, vector<1x1x32xf32>
    %187 = vector.shape_cast %186 : vector<1x1x32xf32> to vector<1x32xf32>
    %c1_111 = arith.constant 1 : index
    %c0_112 = arith.constant 0 : index
    %c0_113 = arith.constant 0 : index
    %188 = vector.load %arg15[%c1_111, %c0_112, %c0_113] : memref<2x1x32xf32, #tpu.memory_space<vmem>>, vector<1x1x32xf32>
    %189 = vector.shape_cast %188 : vector<1x1x32xf32> to vector<1x32xf32>
    %cst_114 = arith.constant dense<0.000000e+00> : vector<8xf32>
    %190 = vector.multi_reduction <add>, %185, %cst_114 [1] : vector<8x32xf32> to vector<8xf32>
    %191 = vector.shape_cast %190 : vector<8xf32> to vector<8x1xf32>
    %cst_115 = arith.constant 3.200000e+01 : f32
    %192 = vector.broadcast %cst_115 : f32 to vector<8x1xf32>
    %193 = arith.divf %191, %192 : vector<8x1xf32>
    %194 = vector.broadcast %193 : vector<8x1xf32> to vector<8x32xf32>
    %195 = arith.subf %185, %194 : vector<8x32xf32>
    %196 = arith.mulf %195, %195 : vector<8x32xf32>
    %cst_116 = arith.constant dense<0.000000e+00> : vector<8xf32>
    %197 = vector.multi_reduction <add>, %196, %cst_116 [1] : vector<8x32xf32> to vector<8xf32>
    %198 = vector.shape_cast %197 : vector<8xf32> to vector<8x1xf32>
    %cst_117 = arith.constant 3.200000e+01 : f32
    %199 = vector.broadcast %cst_117 : f32 to vector<8x1xf32>
    %200 = arith.divf %198, %199 : vector<8x1xf32>
    %201 = vector.broadcast %193 : vector<8x1xf32> to vector<8x32xf32>
    %202 = arith.subf %185, %201 : vector<8x32xf32>
    %cst_118 = arith.constant 9.99999974E-6 : f32
    %203 = vector.broadcast %cst_118 : f32 to vector<8x1xf32>
    %204 = arith.addf %200, %203 : vector<8x1xf32>
    %205 = math.rsqrt %204 : vector<8x1xf32>
    %206 = vector.broadcast %205 : vector<8x1xf32> to vector<8x32xf32>
    %207 = arith.mulf %202, %206 : vector<8x32xf32>
    %208 = vector.broadcast %187 : vector<1x32xf32> to vector<8x32xf32>
    %209 = arith.mulf %207, %208 : vector<8x32xf32>
    %210 = vector.broadcast %189 : vector<1x32xf32> to vector<8x32xf32>
    %211 = arith.addf %209, %210 : vector<8x32xf32>
    %c0_119 = arith.constant 0 : index
    %c0_120 = arith.constant 0 : index
    %212 = vector.load %arg17[%c0_119, %c0_120] : memref<32x256xf32, #tpu.memory_space<vmem>>, vector<32x256xf32>
    %cst_121 = arith.constant dense<0.000000e+00> : vector<8x256xf32>
    %213 = tpu.matmul %211, %212, %cst_121 {dimension_numbers = #tpu.dot_dimension_numbers<[1], [0], [0], [1], [0, 0, 1, 1], [], []>} : vector<8x32xf32>, vector<32x256xf32>, vector<8x256xf32> -> vector<8x256xf32>
    %c0_122 = arith.constant 0 : index
    %c0_123 = arith.constant 0 : index
    %214 = vector.load %arg20[%c0_122, %c0_123] : memref<8x256xf32, #tpu.memory_space<vmem>>, vector<8x256xf32>
    %215 = arith.mulf %213, %214 : vector<8x256xf32>
    %c0_124 = arith.constant 0 : index
    %c0_125 = arith.constant 0 : index
    %216 = vector.load %arg18[%c0_124, %c0_125] : memref<256x128xf32, #tpu.memory_space<vmem>>, vector<256x128xf32>
    %cst_126 = arith.constant dense<0.000000e+00> : vector<8x128xf32>
    %217 = tpu.matmul %215, %216, %cst_126 {dimension_numbers = #tpu.dot_dimension_numbers<[1], [0], [0], [1], [0, 0, 1, 1], [], []>} : vector<8x256xf32>, vector<256x128xf32>, vector<8x128xf32> -> vector<8x128xf32>
    %cst_127 = arith.constant dense<0.000000e+00> : vector<128xf32>
    %218 = vector.multi_reduction <add>, %217, %cst_127 [0] : vector<8x128xf32> to vector<128xf32>
    %219 = vector.shape_cast %218 : vector<128xf32> to vector<1x128xf32>
    %c0_128 = arith.constant 0 : index
    %c0_129 = arith.constant 0 : index
    %220 = vector.load %arg19[%c0_128, %c0_129] : memref<1x128xf32, #tpu.memory_space<vmem>>, vector<1x128xf32>
    %221 = arith.addf %219, %220 : vector<1x128xf32>
    %c0_130 = arith.constant 0 : index
    %c0_131 = arith.constant 0 : index
    %c0_132 = arith.constant 0 : index
    %222 = vector.load %arg21[%c0_130, %c0_131, %c0_132] : memref<1x1x128xf32, #tpu.memory_space<vmem>>, vector<1x1x128xf32>
    %223 = vector.shape_cast %222 : vector<1x1x128xf32> to vector<1x128xf32>
    %224 = vector.shape_cast %221 : vector<1x128xf32> to vector<1x1x128xf32>
    tpu.vector_store %arg21[%c0_130, %c0_131, %c0_132], %224 {strides = array<i32>} : memref<1x1x128xf32, #tpu.memory_space<vmem>>, vector<1x1x128xf32>,
    return
  }
  func.func @transform_0(%arg0: i32) -> (i32, i32, i32) {
    %c0_i32 = arith.constant 0 : i32
    %c0_i32_0 = arith.constant 0 : i32
    %c0_i32_1 = arith.constant 0 : i32
    return %arg0, %c0_i32, %c0_i32_0 : i32, i32, i32
  }
  func.func @transform_1(%arg0: i32) -> (i32, i32) {
    %c0_i32 = arith.constant 0 : i32
    %c0_i32_0 = arith.constant 0 : i32
    %c0_i32_1 = arith.constant 0 : i32
    return %c0_i32, %c0_i32_0 : i32, i32
  }
  func.func @transform_2(%arg0: i32) -> (i32, i32) {
    %c0_i32 = arith.constant 0 : i32
    %c0_i32_0 = arith.constant 0 : i32
    %c0_i32_1 = arith.constant 0 : i32
    return %c0_i32, %c0_i32_0 : i32, i32
  }
  func.func @transform_3(%arg0: i32) -> (i32, i32, i32) {
    %c0_i32 = arith.constant 0 : i32
    %c0_i32_0 = arith.constant 0 : i32
    %c0_i32_1 = arith.constant 0 : i32
    %c0_i32_2 = arith.constant 0 : i32
    return %c0_i32, %c0_i32_0, %c0_i32_1 : i32, i32, i32
  }
  func.func @transform_4(%arg0: i32) -> (i32, i32, i32) {
    %c0_i32 = arith.constant 0 : i32
    %c0_i32_0 = arith.constant 0 : i32
    %c0_i32_1 = arith.constant 0 : i32
    %c0_i32_2 = arith.constant 0 : i32
    return %c0_i32, %c0_i32_0, %c0_i32_1 : i32, i32, i32
  }
  func.func @transform_5(%arg0: i32) -> (i32, i32, i32) {
    %c0_i32 = arith.constant 0 : i32
    %c0_i32_0 = arith.constant 0 : i32
    %c0_i32_1 = arith.constant 0 : i32
    %c0_i32_2 = arith.constant 0 : i32
    return %c0_i32, %c0_i32_0, %c0_i32_1 : i32, i32, i32
  }
  func.func @transform_6(%arg0: i32) -> (i32, i32, i32) {
    %c0_i32 = arith.constant 0 : i32
    %c0_i32_0 = arith.constant 0 : i32
    %c0_i32_1 = arith.constant 0 : i32
    %c0_i32_2 = arith.constant 0 : i32
    return %c0_i32, %c0_i32_0, %c0_i32_1 : i32, i32, i32
  }
  func.func @transform_7(%arg0: i32) -> (i32, i32, i32) {
    %c0_i32 = arith.constant 0 : i32
    %c0_i32_0 = arith.constant 0 : i32
    %c0_i32_1 = arith.constant 0 : i32
    %c0_i32_2 = arith.constant 0 : i32
    return %c0_i32, %c0_i32_0, %c0_i32_1 : i32, i32, i32
  }
  func.func @transform_8(%arg0: i32) -> (i32, i32, i32) {
    %c0_i32 = arith.constant 0 : i32
    %c0_i32_0 = arith.constant 0 : i32
    %c0_i32_1 = arith.constant 0 : i32
    %c0_i32_2 = arith.constant 0 : i32
    return %c0_i32, %c0_i32_0, %c0_i32_1 : i32, i32, i32
  }
  func.func @transform_9(%arg0: i32) -> (i32, i32, i32) {
    %c0_i32 = arith.constant 0 : i32
    %c0_i32_0 = arith.constant 0 : i32
    %c0_i32_1 = arith.constant 0 : i32
    %c0_i32_2 = arith.constant 0 : i32
    return %c0_i32, %c0_i32_0, %c0_i32_1 : i32, i32, i32
  }
  func.func @transform_10(%arg0: i32) -> (i32, i32, i32) {
    %c0_i32 = arith.constant 0 : i32
    %c0_i32_0 = arith.constant 0 : i32
    %c0_i32_1 = arith.constant 0 : i32
    %c0_i32_2 = arith.constant 0 : i32
    return %c0_i32, %c0_i32_0, %c0_i32_1 : i32, i32, i32
  }
  func.func @transform_11(%arg0: i32) -> (i32, i32, i32) {
    %c0_i32 = arith.constant 0 : i32
    %c0_i32_0 = arith.constant 0 : i32
    %c0_i32_1 = arith.constant 0 : i32
    %c0_i32_2 = arith.constant 0 : i32
    return %c0_i32, %c0_i32_0, %c0_i32_1 : i32, i32, i32
  }
  func.func @transform_12(%arg0: i32) -> (i32, i32, i32) {
    %c0_i32 = arith.constant 0 : i32
    %c0_i32_0 = arith.constant 0 : i32
    %c0_i32_1 = arith.constant 0 : i32
    %c0_i32_2 = arith.constant 0 : i32
    return %c0_i32, %c0_i32_0, %c0_i32_1 : i32, i32, i32
  }
  func.func @transform_13(%arg0: i32) -> (i32, i32, i32) {
    %c0_i32 = arith.constant 0 : i32
    %c0_i32_0 = arith.constant 0 : i32
    %c0_i32_1 = arith.constant 0 : i32
    %c0_i32_2 = arith.constant 0 : i32
    return %c0_i32, %c0_i32_0, %c0_i32_1 : i32, i32, i32
  }
  func.func @transform_14(%arg0: i32) -> (i32, i32, i32) {
    %c0_i32 = arith.constant 0 : i32
    %c0_i32_0 = arith.constant 0 : i32
    %c0_i32_1 = arith.constant 0 : i32
    %c0_i32_2 = arith.constant 0 : i32
    return %c0_i32, %c0_i32_0, %c0_i32_1 : i32, i32, i32
  }
  func.func @transform_15(%arg0: i32) -> (i32, i32) {
    %c0_i32 = arith.constant 0 : i32
    %c0_i32_0 = arith.constant 0 : i32
    %c0_i32_1 = arith.constant 0 : i32
    return %c0_i32, %c0_i32_0 : i32, i32
  }
  func.func @transform_16(%arg0: i32) -> (i32, i32) {
    %c0_i32 = arith.constant 0 : i32
    %c0_i32_0 = arith.constant 0 : i32
    %c0_i32_1 = arith.constant 0 : i32
    return %c0_i32, %c0_i32_0 : i32, i32
  }
  func.func @transform_17(%arg0: i32) -> (i32, i32) {
    %c0_i32 = arith.constant 0 : i32
    %c0_i32_0 = arith.constant 0 : i32
    %c0_i32_1 = arith.constant 0 : i32
    return %c0_i32, %c0_i32_0 : i32, i32
  }
  func.func @transform_18(%arg0: i32) -> (i32, i32) {
    %c0_i32 = arith.constant 0 : i32
    %c0_i32_0 = arith.constant 0 : i32
    %c0_i32_1 = arith.constant 0 : i32
    return %c0_i32, %c0_i32_0 : i32, i32
  }
  func.func @transform_19(%arg0: i32) -> (i32, i32) {
    %c0_i32 = arith.constant 0 : i32
    %c0_i32_0 = arith.constant 0 : i32
    %c0_i32_1 = arith.constant 0 : i32
    return %c0_i32, %c0_i32_0 : i32, i32
  }
  func.func @transform_20(%arg0: i32) -> (i32, i32, i32) {
    %c0_i32 = arith.constant 0 : i32
    %c0_i32_0 = arith.constant 0 : i32
    %c0_i32_1 = arith.constant 0 : i32
    return %arg0, %c0_i32, %c0_i32_0 : i32, i32, i32
  }
}

</mosaic_0001>

<bundles_post_ra>
// kernel: _lambda_.1
= control target key start
LH: loop header
LB: loop body
LE: loop exit
PB: predicated region body
PF: predicated region fallthrough
CT: control target
= control target key end

     0   :  { %s2491_s0 = inlined_call_operand.vmem [shape: f32[2,8,4], index: 0, kind: input, shape index: {}]   ;;  %s2492_s1 = inlined_call_operand.vmem [shape: f32[4,32], index: 1, kind: input, shape index: {}]   ;;  %s2493_s2 = inlined_call_operand.vmem [shape: f32[1,32], index: 2, kind: input, shape index: {}]   ;;  %s2494_s3 = inlined_call_operand.vmem [shape: f32[2,32,96], index: 3, kind: input, shape index: {}]   ;;  %s2495_s4 = inlined_call_operand.vmem [shape: f32[2,1,96], index: 4, kind: input, shape index: {}]   ;;  %s2496_s5 = inlined_call_operand.vmem [shape: f32[2,32,32], index: 5, kind: input, shape index: {}]   ;;  %s2497_s6 = inlined_call_operand.vmem [shape: f32[2,1,32], index: 6, kind: input, shape index: {}]   ;;  %s2498_s7 = inlined_call_operand.vmem [shape: f32[2,1,32], index: 7, kind: input, shape index: {}]   ;;  %s2499_s8 = inlined_call_operand.vmem [shape: f32[2,1,32], index: 8, kind: input, shape index: {}]   ;;  %s2500_s9 = inlined_call_operand.vmem [shape: f32[2,32,128], index: 9, kind: input, shape index: {}]   ;;  %s2501_s10 = inlined_call_operand.vmem [shape: f32[2,1,128], index: 10, kind: input, shape index: {}]   ;;  %s2502_s11 = inlined_call_operand.vmem [shape: f32[2,128,32], index: 11, kind: input, shape index: {}]   ;;  %s2503_s12 = inlined_call_operand.vmem [shape: f32[2,1,32], index: 12, kind: input, shape index: {}]   ;;  %s2504_s13 = inlined_call_operand.vmem [shape: f32[2,1,32], index: 13, kind: input, shape index: {}]   ;;  %s2505_s14 = inlined_call_operand.vmem [shape: f32[2,1,32], index: 14, kind: input, shape index: {}]   ;;  %s2506_s15 = inlined_call_operand.vmem [shape: f32[32,32], index: 15, kind: input, shape index: {}]   ;;  %s2507_s16 = inlined_call_operand.vmem [shape: f32[32,256], index: 16, kind: input, shape index: {}]   ;;  %s2508_s17 = inlined_call_operand.vmem [shape: f32[256,128], index: 17, kind: input, shape index: {}]   ;;  %s2509_s18 = inlined_call_operand.vmem [shape: f32[1,128], index: 18, kind: input, shape index: {}]   ;;  %s2510_s19 = inlined_call_operand.vmem [shape: f32[8,256], index: 19, kind: input, shape index: {}]   ;;  %s2511_s20 = inlined_call_operand.hbm [shape: f32[2,1,128], index: 20, kind: output, shape index: {}]  }
   0x1   :  { %2523 = sst [smem:[#allocation11_spill]] %s2491_s0 }
   0x2   :  { %2524 = sst [smem:[#allocation12_spill]] %s2492_s1 }
   0x3   :  { %2525 = sst [smem:[#allocation13_spill]] %s2493_s2 }
   0x4   :  { %2526 = sst [smem:[#allocation14_spill]] %s2494_s3 }
   0x5   :  { %2527 = sst [smem:[#allocation15_spill]] %s2495_s4 }
   0x6   :  { %2528 = sst [smem:[#allocation16_spill]] %s2496_s5 }
   0x7   :  { %2529 = sst [smem:[#allocation17_spill]] %s2509_s18 }
   0x8   :  { %25 = vsyncpa [#allocation3], 0 }
   0x9   :  { %27 = vsyncpa [#allocation3 + $0x1], 0  ;;  %s1916_s1 = smov 0   ;;  %s1918_s22 = smov 0  }
   0xa   :  { %s1920_s23 = smov 0   ;;  %s1922_s24 = smov 0  }
   0xb LB: > { %2530 = sst [smem:[#allocation5_spill]] %s1793_s1  ;;  %s1937_s2 = sadd.s32 4294967295, %s1805_s24   ;;  %s1805_s24 = sphi %s1922_s24, %s2549_s24   ;;  %s1801_s23 = sphi %s1920_s23, %s2551_s23   ;;  %s1797_s22 = sphi %s1918_s22, %s2553_s22   ;;  %s1793_s1 = sphi %s1916_s1, %s2552_s1  }
   0xc   : > { %2531 = sst [smem:[#allocation6_spill]] %s1801_s23  ;;  %s1578_s25 = sadd.s32 4294967294, %s1805_s24  }
   0xd   : > { %2532 = sst [smem:[#allocation7_spill]] %s1805_s24  ;;  %s1941_s3 = sadd.s32 1, %s1805_s24  }
   0xe   : > { %2533 = sst [smem:[#allocation8_spill]] %s1941_s3  ;;  %s465_s26 = sadd.s32 1, %s1801_s23 }
   0xf   : > { %s462_s27 = ssub.s32 %s1805_s24, %s1941_s3  ;;  %p475_p0 = scmp.ne.s32.totalorder %s1801_s23, %s1797_s22 }
  0x10   : > { %p463_p1 = scmp.eq.s32.totalorder %s462_s27, 0  ;;  %p476_p2 = scmp.eq.s32.totalorder %s1937_s2, 1 }
  0x11   : > { %p481_p3 = scmp.ne.s32.totalorder %s1797_s22, %s1793_s1  ;;  %p482_p4 = scmp.eq.s32.totalorder %s1578_s25, 1 }
  0x12   : > { %s1952_s28 = scalar_select %p463_p1, %s1801_s23, %s465_s26  }
  0x13   : > { %p1954_p5 = por %p476_p2, %p475_p0  ;;  %p1958_p6 = por %p482_p4, %p481_p3 }
  0x14   : > { %2534 = sst [smem:[#allocation9_spill]] %s1952_s28  ;;  %p1581_p7 = scmp.ge.s32.totalorder %s1805_s24, 1 }
  0x15   : > { %s2536_s29 = scalar_select %p1958_p6, 1, 0 }
  0x16   : > { %p564_p8 = scmp.lt.s32.totalorder %s1805_s24, 3 }
  0x17   : > { %2537 = sst [smem:[#allocation10_spill]] %s2536_s29 }
  0x18   : > { %p565_p9 = pnand %p1581_p7, %p564_p8 }
  0x19   : > { %s2538_s21 = sld [smem:[#allocation12_spill]] (!%p565_p9)  ;;  %p620_p10 = scmp.lt.s32.totalorder (!%p565_p9), %s1937_s2, 1 }
  0x1a   : > { %568 = sbr.rel (%p565_p9) target bundleno = 3653 (0xe45), region = 100  ;;  %s2539_s27 = sld [smem:[#allocation14_spill]] (!%p565_p9) }
  0x1b   : > { %s2540_s1 = sld [smem:[#allocation11_spill]] (!%p565_p9)  ;;  %s1808_s30 = smov (!%p565_p9), 96  }
  0x1c   : > { %s2541_s26 = sld [smem:[#allocation13_spill]] (!%p565_p9)  ;;  %s2544_s0 = smov (!%p565_p9), 64  }
  0x1d   : > { %s2543_s5 = sld [smem:[#allocation16_spill]] (!%p565_p9)  ;;  %s1519_s28 = scalar_lea.hbm (!%p565_p9), %s2511_s20, %s1937_s2 }
  0x1e   : > { %s1763_s23 = scalar_lea.hbm (!%p565_p9), %s2511_s20, 2 }
  0x1f   : > { %v629_v0 = vld [vmem:[%s2538_s21] sm:$0xf]  ;;  %vm638_vm0 = vcmask 1043456   ;;  %s621_s3 = scalar_select %p620_p10, %s1937_s2, 1  ;;  %vm634_vm1 = vcmask 31744   ;;  %v1987_v6 = vld [vmem:[%s2506_s15 + $0x18] sm:$0xff] }
  0x20   : > { %v665_v1 = vld [vmem:[%s2539_s27 + $0x18] sm:$0xff]  ;;  %1583 = vmatpush.msk.msra.mxu0 %vm638_vm0, %v629_v0  ;;  %v664_v2 = vld [vmem:[%s2539_s27 + $0x10] sm:$0xff]  ;;  %v663_v4 = vld [vmem:[%s2539_s27 + $0x8] sm:$0xff]  ;;  %vm670_vm2 = vcmask 261120  }
  0x21   : > { %686 = vmatpush.msra.mxu1 %v665_v1  ;;  %s1582_s29 = sshll.u32 %s621_s3, 3  ;;  %v662_v5 = vld [vmem:[%s2539_s27] sm:$0xff]  ;;  %v1992_v7 = vld [vmem:[%s2506_s15 + $0x8] sm:$0xff]  ;;  %v1999_v8 = vld [vmem:[%s2506_s15 + $0x10] sm:$0xff]  ;;  %s2542_s3 = sld [smem:[#allocation15_spill]] }
  0x22   : > { %s623_s21 = scalar_lea.vmem %s2540_s1, %s1582_s29  ;;  %s1807_s1 = smov 32   ;;  %v2004_v9 = vld [vmem:[%s2506_s15] sm:$0xff] }
  0x23   : > { %687 = vmatpush.msra.mxu1 %v664_v2  ;;  %v628_v3 = vld [vmem:[%s623_s21] sm:$0xff]  ;;  %704 = vrot.lane.b32.xlu0 %v1987_v6, %s1807_s1  ;;  %v857_v51 = vld [vmem:[%s2543_s5 + $0x18] sm:$0xff]  ;;  %v856_v52 = vld [vmem:[%s2543_s5 + $0x10] sm:$0xff]  ;;  %s2545_s29 = sld [smem:[#allocation17_spill]]  ;;  %s1523_s21 = sshll.u32 %s1519_s28, 4  ;;  %s1524_s21 = int_to_ptr.hbm [resolvable:$true] %s1523_s21 }
  0x24   : > { %1584 = vmatmul.msk.f32.vlgmr.msra.gmra.mxu0 %vm634_vm1, %v628_v3  ;;  %700 = vrot.lane.b32.xlu1 %v1992_v7, %s1807_s1  ;;  %v1708_v10 = vld [vmem:[%s2541_s26] ss:$0 sm:$0xff]  ;;  %v855_v53 = vld [vmem:[%s2543_s5 + $0x8] sm:$0xff]  ;;  %s618_s26 = sand.u32 1, %s1797_s22  }
  0x25   : > { %688 = vmatpush.msra.mxu1 %v663_v4  ;;  %v854_v54 = vld [vmem:[%s2543_s5] sm:$0xff]  ;;  %s1511_s25 = scalar_lea.sflag [#allocation3], %s618_s26 }
  0x26   : > { %v1710_v4 = vld [vmem:[%s2497_s6] ss:$0 sm:$0xff] }
  0x27   : > { %689 = vmatpush.msra.mxu1 %v662_v5  ;;  %v1709_v14 = vld [vmem:[%s2542_s3] ss:$0 sm:$0xff] }
  0x2b   : > { %702 = vrot.lane.b32.xlu0 %v1999_v8, %s1807_s1 }
  0x2c   : > { %698 = vrot.lane.b32.xlu1 %v2004_v9, %s1807_s1  ;;  %s2520_s1 = smov 64  }
  0x95   : > { %v2020_v15 = vpop.permute.xlu0 %704 }
  0x96   : > { %v2015_v13 = vpop.permute.xlu1 %700 }
  0x9d   : > { %v2030_v22 = vpop.permute.xlu0 %702 }
  0x9e   : > { %v2022_v17 = vpop.permute.xlu1 %698 }
  0xa1   : > { %v659_v11 = vpop.f32.mrf.mxu0 }
  0xa2   : > { %v2011_v12 = vadd.f32 %v1708_v10, %v659_v11 }
  0xa4   : > { %1585 = vmatmul.msk.f32.vlgmr.msra.gmra.mxu1 %vm670_vm2, %v2011_v12 }
 0x121   : > { %v691_v16 = vpop.f32.mrf.mxu1 }
 0x122   : > { %v692_v18 = vadd.f32 %v1709_v14, %v691_v16  ;;  %v1810_v16 = vmov 32.0  }
 0x124   : > { %v710_v19 = vmul.f32 %v2022_v17, %v692_v18  ;;  %v713_v20 = vmul.f32 %v2020_v15, %v692_v18  ;;  %v711_v21 = vmul.f32 %v2015_v13, %v692_v18  ;;  %v712_v23 = vmul.f32 %v2030_v22, %v692_v18 }
 0x126   : > { %740 = vrot.lane.b32.xlu2 %v713_v20, %s1808_s30  ;;  %736 = vrot.lane.b32.xlu0 %v711_v21, %s1808_s30 }
 0x127   : > { %734 = vrot.lane.b32.xlu1 %v710_v19, %s1808_s30 }
 0x12e   : > { %738 = vrot.lane.b32.xlu2 %v712_v23, %s1808_s30  ;;  %718 = vrot.lane.b32.xlu0 %v1999_v8, %s2520_s1 }
 0x12f   : > { %716 = vrot.lane.b32.xlu1 %v1992_v7, %s2520_s1 }
 0x136   : > { %720 = vrot.lane.b32.xlu2 %v1987_v6, %s2520_s1 }
 0x13e   : > { %714 = vrot.lane.b32.xlu2 %v2004_v9, %s2520_s1 }
 0x180   : > { %v741_v24 = vpop.permute.xlu2 %740 }
 0x181   : > { %1586 = vmatpush.xpose.msk.msra.mxu2 %vm670_vm2, %v741_v24 }
 0x188   : > { %v739_v25 = vpop.permute.xlu2 %738 }
 0x189   : > { %1587 = vmatpush.xpose.msk.msra.mxu2 %vm670_vm2, %v739_v25 }
 0x190   : > { %v2044_v26 = vpop.permute.xlu2 %720 }
 0x191   : > { %v729_v31 = vmul.f32 %v2044_v26, %v692_v18 }
 0x198   : > { %v737_v27 = vpop.permute.xlu0 %736  ;;  %v2048_v29 = vpop.permute.xlu2 %714 }
 0x199   : > { %v735_v28 = vpop.permute.xlu1 %734  ;;  %1588 = vmatpush.xpose.msk.msra.mxu2 %vm670_vm2, %v737_v27  ;;  %v726_v34 = vmul.f32 %v2048_v29, %v692_v18 }
 0x19d   : > { %1589 = vmatpush.xpose.msk.msra.mxu2 %vm670_vm2, %v735_v28 }
 0x1a0   : > { %v2050_v30 = vpop.permute.xlu0 %718  ;;  %1590 = vmatmul.msk.f32.vlgmr.msra.gmra.mxu2 %vm670_vm2, %v692_v18 }
 0x1a1   : > { %v728_v32 = vmul.f32 %v2050_v30, %v692_v18  ;;  %v2055_v33 = vpop.permute.xlu1 %716 }
 0x1a2   : > { %v727_v35 = vmul.f32 %v2055_v33, %v692_v18 }
 0x1a3   : > { %v1688_v36 = vpack.i.bf16 %v728_v32, %v729_v31  ;;  %v928_v32 = vld [vmem:[%s2500_s9 + $0x18] sm:$0xff] }
 0x1a4   : > { %v1693_v37 = vpack.i.bf16 %v726_v34, %v727_v35  ;;  %v927_v34 = vld [vmem:[%s2500_s9 + $0x10] sm:$0xff]  ;;  %948 = vmatpush.msra.mxu3 %v928_v32  ;;  %v926_v35 = vld [vmem:[%s2500_s9 + $0x8] sm:$0xff] }
 0x1a5   : > { %1689 = vrot.lane.b32.xlu1 %v1688_v36, %s2520_s1  ;;  %v925_v36 = vld [vmem:[%s2500_s9] sm:$0xff]  ;;  %v1596_v32 = vld [vmem:[%s2539_s27 + $0x28] sm:$0xff] }
 0x1a6   : > { %1694 = vrot.lane.b32.xlu2 %v1693_v37, %s2520_s1  ;;  %949 = vmatpush.msra.mxu3 %v927_v34  ;;  %v972_v37 = vld [vmem:[%s2502_s11 + $0x78] sm:$0xff]  ;;  %v1595_v34 = vld [vmem:[%s2539_s27 + $0x20] sm:$0xff] }
 0x1a7   : > { %977 = vmatpush.msrb.mxu0 %v972_v37 }
 0x1a8   : > { %950 = vmatpush.msra.mxu3 %v926_v35 }
 0x1aa   : > { %951 = vmatpush.msra.mxu3 %v925_v36 }
 0x200   : > { %v1695_v40 = vpop.permute.xlu2 %1694 }
 0x201   : > { %v1696_v42 = vunpack.i.l.bf16 %v1695_v40  ;;  %v1697_v43 = vunpack.i.h.bf16 %v1695_v40 }
 0x217   : > { %v1690_v38 = vpop.permute.xlu1 %1689 }
 0x218   : > { %v1691_v39 = vunpack.i.l.bf16 %v1690_v38  ;;  %v1692_v41 = vunpack.i.h.bf16 %v1690_v38  ;;  %v971_v38 = vld [vmem:[%s2502_s11 + $0x70] sm:$0xff] }
 0x219   : > { %978 = vmatpush.msrb.mxu0 %v971_v38 }
 0x21a   : > { %811 = vmatpush.msrb.mxu1 %v1691_v39  ;;  %v970_v39 = vld [vmem:[%s2502_s11 + $0x68] sm:$0xff] }
 0x21b   : > { %979 = vmatpush.msrb.mxu0 %v970_v39 }
 0x21c   : > { %812 = vmatpush.msrb.mxu1 %v1692_v41 }
 0x21e   : > { %813 = vmatpush.msrb.mxu1 %v1696_v42  ;;  %v969_v42 = vld [vmem:[%s2502_s11 + $0x60] sm:$0xff] }
 0x21f   : > { %980 = vmatpush.msrb.mxu0 %v969_v42 }
 0x220   : > { %814 = vmatpush.msrb.mxu1 %v1697_v43 }
 0x222   : > { %831 = vmatpush.msra.mxu1 %v1987_v6 }
 0x223   : > { %v770_v44 = vpop.f32.mrf.mxu2 }
 0x224   : > { %832 = vmatpush.msra.mxu1 %v1999_v8  ;;  %v773_v45 = vmul.f32 0.35355338, %v770_v44  ;;  %v968_v44 = vld [vmem:[%s2502_s11 + $0x58] sm:$0xff] }
 0x225   : > { %981 = vmatpush.msrb.mxu0 %v968_v44 }
 0x226   : > { %833 = vmatpush.msra.mxu1 %v1992_v7  ;;  %v774_v46 = vsel %vm670_vm2, %v773_v45, -inf }
 0x227   : > { %775 = vmax.xlane.f32.xlu0 %v774_v46  ;;  %v966_v46 = vld [vmem:[%s2502_s11 + $0x48] sm:$0xff] }
 0x228   : > { %834 = vmatpush.msra.mxu1 %v2004_v9 }
 0x29a   : > { %v776_v47 = vpop.xlane.xlu0 %775 }
 0x29b   : > { %v777_v48 = vsub.f32 %v773_v45, %v776_v47  ;;  %v967_v45 = vld [vmem:[%s2502_s11 + $0x50] sm:$0xff]  ;;  %v965_v47 = vld [vmem:[%s2502_s11 + $0x40] sm:$0xff] }
 0x29c   : > { %982 = vmatpush.msrb.mxu0 %v967_v45 }
 0x29d   : > { %v778_v49 = vmul.f32 1.442695, %v777_v48 }
 0x29e   : > { %983 = vmatpush.msrb.mxu0 %v966_v46  ;;  %v1717_v46 = vld [vmem:[%s2542_s3 + $0x1] ss:$0 sm:$0xff]  ;;  %s1757_s3 = sshra.s32 %s1524_s21, 4  ;;  %s1758_s3 = int_to_ptr.hbm [resolvable:$true] %s1757_s3 }
 0x29f   : > { %1725 = vpow2.f32 %v778_v49  ;;  %v964_v49 = vld [vmem:[%s2502_s11 + $0x38] sm:$0xff]  ;;  %p1764_p0 = scmp.lt.s32.totalorder %s1758_s3, %s2511_s20 }
 0x2a0   : > { %984 = vmatpush.msrb.mxu0 %v965_v47 }
 0x2a2   : > { %985 = vmatpush.msrb.mxu0 %v964_v49 }
 0x2a5   : > { %v1726_v50 = vpop.eup %1725 }
 0x2a6   : > { %1591 = vmatmul.msk.f32.vlgmr.msrb.gmra.mxu1 %vm670_vm2, %v1726_v50 }
 0x2a7   : > { %877 = vmatpush.msrb.mxu1 %v857_v51  ;;  %v963_v51 = vld [vmem:[%s2502_s11 + $0x30] sm:$0xff] }
 0x2a8   : > { %986 = vmatpush.msrb.mxu0 %v963_v51 }
 0x2a9   : > { %878 = vmatpush.msrb.mxu1 %v856_v52 }
 0x2ab   : > { %879 = vmatpush.msrb.mxu1 %v855_v53  ;;  %v962_v53 = vld [vmem:[%s2502_s11 + $0x28] sm:$0xff] }
 0x2ac   : > { %987 = vmatpush.msrb.mxu0 %v962_v53 }
 0x2ad   : > { %880 = vmatpush.msrb.mxu1 %v854_v54 }
 0x2ae   : > { %1592 = vmatmul.msk.f32.vlgmr.msra.gmra.mxu1 %vm670_vm2, %v1726_v50 }
 0x323   : > { %v816_v55 = vpop.f32.mrf.mxu1 }
 0x32b   : > { %v836_v56 = vpop.f32.mrf.mxu1 }
 0x32c   : > { %1727 = vrcp.f32 %v836_v56  ;;  %v850_v60 = vand.u32 2147483648, %v836_v56  ;;  %v848_v62 = vand.u32 2147483647, %v836_v56  ;;  %vm844_vm4 = vweird.f32 %v836_v56 }
 0x32d   : > { %1729 = vrcp.f32 %v1810_v16 }
 0x32e   : > { %v851_v0 = vor.u32 1.1754944e-38, %v850_v60  ;;  %vm849_vm6 = vcmp.eq.f32.partialorder %v848_v62, 8.507059e+37  ;;  %v1712_v62 = vld [vmem:[%s2499_s8] ss:$0 sm:$0xff] }
 0x332   : > { %v1728_v57 = vpop.eup %1727 }
 0x333   : > { %v840_v58 = vmul.f32 %v1728_v57, %v836_v56  ;;  %vm845_vm3 = vweird.f32 %v1728_v57  ;;  %v1730_v18 = vpop.eup %1729 }
 0x334   : > { %vm846_vm5 = vmor %vm844_vm4, %vm845_vm3  ;;  %v892_v19 = vmul.f32 32.0, %v1730_v18  ;;  %vm896_vm7 = vweird.f32 %v1730_v18 }
 0x335   : > { %v841_v59 = vsub.f32 1.0, %v840_v58 }
 0x336   : > { %v893_v20 = vsub.f32 1.0, %v892_v19 }
 0x337   : > { %v842_v61 = vmul.f32 %v1728_v57, %v841_v59  ;;  %v1711_v59 = vld [vmem:[%s2498_s7] ss:$0 sm:$0xff] }
 0x338   : > { %v894_v21 = vmul.f32 %v1730_v18, %v893_v20 }
 0x339   : > { %v843_v63 = vadd.f32 %v1728_v57, %v842_v61 }
 0x33a   : > { %v895_v23 = vadd.f32 %v1730_v18, %v894_v21 }
 0x33b   : > { %v847_v1 = vsel %vm846_vm5, %v1728_v57, %v843_v63  ;;  %v960_v57 = vld [vmem:[%s2502_s11 + $0x18] sm:$0xff] }
 0x33c   : > { %v852_v2 = vsel %vm849_vm6, %v851_v0, %v847_v1  ;;  %v2086_v24 = vsel %vm896_vm7, %v1730_v18, %v895_v23  ;;  %v959_v1 = vld [vmem:[%s2502_s11 + $0x10] sm:$0xff] }
 0x33d   : > { %v853_v3 = vmul.f32 %v852_v2, %v816_v55  ;;  %v961_v55 = vld [vmem:[%s2502_s11 + $0x20] sm:$0xff]  ;;  %v958_v2 = vld [vmem:[%s2502_s11 + $0x8] sm:$0xff] }
 0x33e   : > { %988 = vmatpush.msrb.mxu0 %v961_v55 }
 0x33f   : > { %1593 = vmatmul.msk.f32.vlgmr.msrb.gmra.mxu1 %vm670_vm2, %v853_v3  ;;  %v957_v3 = vld [vmem:[%s2502_s11] sm:$0xff] }
 0x340   : > { %989 = vmatpush.msrb.mxu0 %v960_v57 }
 0x342   : > { %990 = vmatpush.msrb.mxu0 %v959_v1 }
 0x344   : > { %991 = vmatpush.msrb.mxu0 %v958_v2 }
 0x346   : > { %992 = vmatpush.msrb.mxu0 %v957_v3 }
 0x3bc   : > { %v882_v5 = vpop.f32.mrf.mxu1 }
 0x3bd   : > { %v883_v10 = vadd.f32 %v1710_v4, %v882_v5  ;;  %v1713_v4 = vld [vmem:[%s2501_s10] ss:$0 sm:$0xff] }
 0x3bf   : > { %v885_v11 = vadd.f32 %v883_v10, %v2011_v12 }
 0x3c1   : > { %v888_v14 = vsel %vm670_vm2, %v885_v11, 0.0 }
 0x3c2   : > { %889 = vadd.xlane.f32.xlu1 %v888_v14  ;;  %v1714_v14 = vld [vmem:[%s2503_s12] ss:$0 sm:$0xff] }
 0x435   : > { %v890_v25 = vpop.xlane.xlu1 %889 }
 0x436   : > { %v898_v27 = vmul.f32 %v2086_v24, %v890_v25 }
 0x438   : > { %v899_v28 = vsub.f32 %v885_v11, %v898_v27 }
 0x43a   : > { %v900_v31 = vmul.f32 %v899_v28, %v899_v28 }
 0x43c   : > { %v901_v12 = vsel %vm670_vm2, %v900_v31, 0.0  ;;  %v1598_v31 = vld [vmem:[%s2539_s27 + $0x38] sm:$0xff] }
 0x43d   : > { %902 = vadd.xlane.f32.xlu2 %v901_v12  ;;  %1055 = vmatpush.msra.mxu1 %v1598_v31  ;;  %v1597_v12 = vld [vmem:[%s2539_s27 + $0x30] sm:$0xff] }
 0x43f   : > { %1056 = vmatpush.msra.mxu1 %v1597_v12 }
 0x441   : > { %1057 = vmatpush.msra.mxu1 %v1596_v32 }
 0x443   : > { %1058 = vmatpush.msra.mxu1 %v1595_v34  ;;  %v1718_v34 = vld [vmem:[%s2497_s6 + $0x1] ss:$0 sm:$0xff] }
 0x445   : > { %1172 = vmatpush.msrb.mxu1 %v1987_v6  ;;  %v1715_v6 = vld [vmem:[%s2504_s13] ss:$0 sm:$0xff] }
 0x447   : > { %1173 = vmatpush.msrb.mxu1 %v1999_v8 }
 0x449   : > { %1174 = vmatpush.msrb.mxu1 %v1992_v7  ;;  %v1716_v7 = vld [vmem:[%s2505_s14] ss:$0 sm:$0xff] }
 0x44b   : > { %1175 = vmatpush.msrb.mxu1 %v2004_v9 }
 0x4b0   : > { %v903_v40 = vpop.xlane.xlu2 %902 }
 0x4b1   : > { %v904_v41 = vmul.f32 %v903_v40, %v2086_v24 }
 0x4b3   : > { %v905_v43 = vadd.f32 1e-05, %v904_v41 }
 0x4b5   : > { %1731 = vrsqrt.f32 %v905_v43  ;;  %vm912_vm9 = vweird.f32 %v905_v43 }
 0x4bb   : > { %v1732_v48 = vpop.eup %1731 }
 0x4bc   : > { %v907_v50 = vmul.f32 %v1732_v48, %v905_v43  ;;  %vm913_vm8 = vweird.f32 %v1732_v48 }
 0x4bd   : > { %vm914_vm10 = vmor %vm912_vm9, %vm913_vm8 }
 0x4be   : > { %v908_v52 = vmul.f32 %v1732_v48, %v907_v50 }
 0x4c0   : > { %v909_v54 = vmul.f32 0.5, %v908_v52 }
 0x4c2   : > { %v910_v56 = vsub.f32 1.5, %v909_v54 }
 0x4c4   : > { %v911_v58 = vmul.f32 %v1732_v48, %v910_v56 }
 0x4c6   : > { %v915_v60 = vsel %vm914_vm10, %v1732_v48, %v911_v58 }
 0x4c7   : > { %v916_v61 = vmul.f32 %v915_v60, %v899_v28 }
 0x4c9   : > { %v920_v63 = vmul.f32 %v1711_v59, %v916_v61 }
 0x4cb   : > { %v924_v0 = vadd.f32 %v1712_v62, %v920_v63 }
 0x4cd   : > { %1594 = vmatmul.msk.f32.vlgmr.msra.gmra.mxu3 %vm670_vm2, %v924_v0 }
 0x550   : > { %v953_v5 = vpop.f32.mrf.mxu3 }
 0x551   : > { %v954_v10 = vadd.f32 %v1713_v4, %v953_v5  ;;  %v1611_v4 = vld [vmem:[%s2543_s5 + $0x38] sm:$0xff]  ;;  %v1610_v5 = vld [vmem:[%s2543_s5 + $0x30] sm:$0xff] }
 0x553   : > { %v956_v11 = vmax.f32 %v954_v10, 0.0  ;;  %v1609_v10 = vld [vmem:[%s2543_s5 + $0x28] sm:$0xff] }
 0x555   : > { %993 = vmatmul.f32.vlgmr.msrb.gmra.mxu0 %v956_v11  ;;  %v1608_v11 = vld [vmem:[%s2543_s5 + $0x20] sm:$0xff]  ;;  %s1759_s5 = scalar_lea.hbm %s1758_s3, 1 }
 0x556   : > { %p1760_p11 = scmp.ne.s32.totalorder %s1758_s3, %s1759_s5  ;;  %p1765_p1 = scmp.lt.s32.totalorder %s1763_s23, %s1759_s5 }
 0x558   : > { %p1761_p12 = pnand %p1760_p11, %p1954_p5  ;;  %p1766_p2 = por %p1765_p1, %p1764_p0 }
 0x55a   : > { %p1762_p13 = pneg %p1761_p12 }
 0x55c   : > { %p1767_p3 = pnand %p1766_p2, %p1762_p13 }
 0x5d2   : > { %v994_v16 = vpop.f32.mrf.mxu0 }
 0x5d3   : > { %v995_v18 = vadd.f32 %v1714_v14, %v994_v16 }
 0x5d5   : > { %v997_v19 = vadd.f32 %v995_v18, %v924_v0 }
 0x5d7   : > { %v1000_v20 = vsel %vm670_vm2, %v997_v19, 0.0 }
 0x5d8   : > { %1001 = vadd.xlane.f32.xlu0 %v1000_v20 }
 0x64b   : > { %v1002_v21 = vpop.xlane.xlu0 %1001 }
 0x64c   : > { %v1003_v23 = vmul.f32 %v1002_v21, %v2086_v24 }
 0x64e   : > { %v1004_v25 = vsub.f32 %v997_v19, %v1003_v23 }
 0x650   : > { %v1005_v27 = vmul.f32 %v1004_v25, %v1004_v25 }
 0x652   : > { %v1006_v28 = vsel %vm670_vm2, %v1005_v27, 0.0 }
 0x653   : > { %1007 = vadd.xlane.f32.xlu2 %v1006_v28 }
 0x6c6   : > { %v1008_v35 = vpop.xlane.xlu2 %1007 }
 0x6c7   : > { %v1009_v36 = vmul.f32 %v1008_v35, %v2086_v24 }
 0x6c9   : > { %v1010_v37 = vadd.f32 1e-05, %v1009_v36 }
 0x6cb   : > { %1733 = vrsqrt.f32 %v1010_v37  ;;  %vm1017_vm12 = vweird.f32 %v1010_v37 }
 0x6d1   : > { %v1734_v38 = vpop.eup %1733 }
 0x6d2   : > { %v1012_v39 = vmul.f32 %v1734_v38, %v1010_v37  ;;  %vm1018_vm11 = vweird.f32 %v1734_v38 }
 0x6d3   : > { %vm1019_vm13 = vmor %vm1017_vm12, %vm1018_vm11 }
 0x6d4   : > { %v1013_v40 = vmul.f32 %v1734_v38, %v1012_v39 }
 0x6d6   : > { %v1014_v41 = vmul.f32 0.5, %v1013_v40 }
 0x6d8   : > { %v1015_v42 = vsub.f32 1.5, %v1014_v41 }
 0x6da   : > { %v1016_v43 = vmul.f32 %v1734_v38, %v1015_v42 }
 0x6dc   : > { %v1020_v8 = vsel %vm1019_vm13, %v1734_v38, %v1016_v43 }
 0x6dd   : > { %v1021_v44 = vmul.f32 %v1020_v8, %v1004_v25  ;;  %v1618_v8 = vld [vmem:[%s2500_s9 + $0x30] sm:$0xff] }
 0x6df   : > { %v1025_v9 = vmul.f32 %v1715_v6, %v1021_v44  ;;  %v1619_v6 = vld [vmem:[%s2500_s9 + $0x38] sm:$0xff]  ;;  %v1617_v44 = vld [vmem:[%s2500_s9 + $0x28] sm:$0xff] }
 0x6e1   : > { %v2190_v45 = vadd.f32 %v1716_v7, %v1025_v9  ;;  %v1616_v7 = vld [vmem:[%s2500_s9 + $0x20] sm:$0xff]  ;;  %v1637_v9 = vld [vmem:[%s2502_s11 + $0xf8] sm:$0xff] }
 0x6e3   : > { %1600 = vmatmul.msk.f32.vlgmr.msra.gmra.mxu1 %vm670_vm2, %v2190_v45 }
 0x6e4   : > { %1288 = vmatpush.msra.mxu1 %v1619_v6  ;;  %v1442_v6 = vld [vmem:[%s2508_s17 + $0x68] sm:$0xff] }
 0x6e6   : > { %1289 = vmatpush.msra.mxu1 %v1618_v8 }
 0x6e8   : > { %1290 = vmatpush.msra.mxu1 %v1617_v44  ;;  %v1457_v44 = vld [vmem:[%s2508_s17 + $0xe0] sm:$0xff] }
 0x6ea   : > { %1291 = vmatpush.msra.mxu1 %v1616_v7  ;;  %v1441_v7 = vld [vmem:[%s2508_s17 + $0x60] sm:$0xff] }
 0x760   : > { %v1060_v47 = vpop.f32.mrf.mxu1 }
 0x761   : > { %v1061_v48 = vadd.f32 %v1717_v46, %v1060_v47  ;;  %v1635_v46 = vld [vmem:[%s2502_s11 + $0xe8] sm:$0xff] }
 0x763   : > { %v1066_v49 = vmul.f32 %v1061_v48, %v2020_v15  ;;  %v1065_v50 = vmul.f32 %v1061_v48, %v2030_v22  ;;  %v1064_v51 = vmul.f32 %v1061_v48, %v2015_v13  ;;  %v1067_v52 = vmul.f32 %v1061_v48, %v2048_v29 }
 0x764   : > { %v1068_v53 = vmul.f32 %v1061_v48, %v2055_v33  ;;  %v1063_v54 = vmul.f32 %v1061_v48, %v2022_v17  ;;  %v1069_v15 = vmul.f32 %v1061_v48, %v2050_v30  ;;  %v1070_v13 = vmul.f32 %v1061_v48, %v2044_v26 }
 0x765   : > { %1081 = vrot.lane.b32.xlu0 %v1066_v49, %s1808_s30  ;;  %1079 = vrot.lane.b32.xlu1 %v1065_v50, %s1808_s30  ;;  %v1634_v49 = vld [vmem:[%s2502_s11 + $0xe0] sm:$0xff] }
 0x766   : > { %1077 = vrot.lane.b32.xlu2 %v1064_v51, %s1808_s30  ;;  %v1703_v55 = vpack.i.bf16 %v1067_v52, %v1068_v53  ;;  %v1698_v22 = vpack.i.bf16 %v1069_v15, %v1070_v13  ;;  %v1633_v51 = vld [vmem:[%s2502_s11 + $0xd8] sm:$0xff]  ;;  %v1632_v52 = vld [vmem:[%s2502_s11 + $0xd0] sm:$0xff]  ;;  %v1631_v53 = vld [vmem:[%s2502_s11 + $0xc8] sm:$0xff] }
 0x767   : > { %v1629_v15 = vld [vmem:[%s2502_s11 + $0xb8] sm:$0xff] }
 0x76d   : > { %1075 = vrot.lane.b32.xlu0 %v1063_v54, %s1808_s30  ;;  %v1630_v54 = vld [vmem:[%s2502_s11 + $0xc0] sm:$0xff] }
 0x76e   : > { %1704 = vrot.lane.b32.xlu2 %v1703_v55, %s2544_s0 }
 0x775   : > { %1699 = vrot.lane.b32.xlu0 %v1698_v22, %s2544_s0  ;;  %v1628_v22 = vld [vmem:[%s2502_s11 + $0xb0] sm:$0xff]  ;;  %s619_s0 = scalar_lea.vmem [#allocation2], %s618_s26 }
 0x776   : > { %s1521_s30 = sshll.u32 %s619_s0, 4  ;;  %s1522_s30 = int_to_ptr.vmem [resolvable:$true] %s1521_s30 }
 0x7c0   : > { %v1078_v33 = vpop.permute.xlu2 %1077 }
 0x7c8   : > { %v1705_v26 = vpop.permute.xlu2 %1704 }
 0x7c9   : > { %v1706_v59 = vunpack.i.l.bf16 %v1705_v26  ;;  %v1707_v60 = vunpack.i.h.bf16 %v1705_v26 }
 0x7d7   : > { %v1082_v56 = vpop.permute.xlu0 %1081  ;;  %v1080_v29 = vpop.permute.xlu1 %1079 }
 0x7d8   : > { %1601 = vmatpush.xpose.msk.msrb.mxu2 %vm670_vm2, %v1082_v56 }
 0x7dc   : > { %1602 = vmatpush.xpose.msk.msrb.mxu2 %vm670_vm2, %v1080_v29  ;;  %v1627_v29 = vld [vmem:[%s2502_s11 + $0xa8] sm:$0xff] }
 0x7df   : > { %v1076_v17 = vpop.permute.xlu0 %1075 }
 0x7e0   : > { %1603 = vmatpush.xpose.msk.msrb.mxu2 %vm670_vm2, %v1078_v33 }
 0x7e4   : > { %1604 = vmatpush.xpose.msk.msrb.mxu2 %vm670_vm2, %v1076_v17  ;;  %v1626_v17 = vld [vmem:[%s2502_s11 + $0xa0] sm:$0xff] }
 0x7e7   : > { %1605 = vmatmul.msk.f32.vlgmr.msrb.gmra.mxu2 %vm670_vm2, %v1061_v48  ;;  %v1700_v30 = vpop.permute.xlu0 %1699 }
 0x7e8   : > { %v1701_v57 = vunpack.i.l.bf16 %v1700_v30  ;;  %v1702_v58 = vunpack.i.h.bf16 %v1700_v30  ;;  %1319 = vmatpush.msra.mxu2 %v1637_v9 }
 0x7ea   : > { %1152 = vmatpush.msrb.mxu3 %v1701_v57  ;;  %v1625_v57 = vld [vmem:[%s2502_s11 + $0x98] sm:$0xff] }
 0x7ec   : > { %1153 = vmatpush.msrb.mxu3 %v1702_v58  ;;  %v1719_v58 = vld [vmem:[%s2498_s7 + $0x1] ss:$0 sm:$0xff] }
 0x7ee   : > { %1154 = vmatpush.msrb.mxu3 %v1706_v59 }
 0x7f0   : > { %1155 = vmatpush.msrb.mxu3 %v1707_v60 }
 0x7f2   : > { %1220 = vmatpush.msra.mxu3 %v1611_v4 }
 0x7f4   : > { %1221 = vmatpush.msra.mxu3 %v1610_v5 }
 0x7f6   : > { %1222 = vmatpush.msra.mxu3 %v1609_v10 }
 0x7f8   : > { %1223 = vmatpush.msra.mxu3 %v1608_v11  ;;  %v1722_v11 = vld [vmem:[%s2503_s12 + $0x1] ss:$0 sm:$0xff] }
 0x86a   : > { %v1111_v61 = vpop.f32.mrf.mxu2 }
 0x86b   : > { %v1114_v62 = vmul.f32 0.35355338, %v1111_v61  ;;  %v1720_v61 = vld [vmem:[%s2499_s8 + $0x1] ss:$0 sm:$0xff] }
 0x86d   : > { %v1115_v63 = vsel %vm670_vm2, %v1114_v62, -inf }
 0x86e   : > { %1116 = vmax.xlane.f32.xlu1 %v1115_v63 }
 0x8e1   : > { %v1117_v0 = vpop.xlane.xlu1 %1116 }
 0x8e2   : > { %v1118_v1 = vsub.f32 %v1114_v62, %v1117_v0  ;;  %v1624_v0 = vld [vmem:[%s2502_s11 + $0x90] sm:$0xff] }
 0x8e4   : > { %v1119_v2 = vmul.f32 1.442695, %v1118_v1  ;;  %v1623_v1 = vld [vmem:[%s2502_s11 + $0x88] sm:$0xff] }
 0x8e6   : > { %1735 = vpow2.f32 %v1119_v2  ;;  %v1622_v2 = vld [vmem:[%s2502_s11 + $0x80] sm:$0xff] }
 0x8ec   : > { %v1736_v3 = vpop.eup %1735 }
 0x8ed   : > { %1606 = vmatmul.msk.f32.vlgmr.msrb.gmra.mxu3 %vm670_vm2, %v1736_v3  ;;  %1607 = vmatmul.msk.f32.vlgmr.msrb.gmra.mxu1 %vm670_vm2, %v1736_v3  ;;  %v1721_v3 = vld [vmem:[%s2501_s10 + $0x1] ss:$0 sm:$0xff] }
 0x96a   : > { %v1177_v14 = vpop.f32.mrf.mxu1 }
 0x96b   : > { %1737 = vrcp.f32 %v1177_v14  ;;  %v1191_v20 = vand.u32 2147483648, %v1177_v14  ;;  %v1189_v23 = vand.u32 2147483647, %v1177_v14  ;;  %vm1185_vm15 = vweird.f32 %v1177_v14 }
 0x96d   : > { %v1192_v27 = vor.u32 1.1754944e-38, %v1191_v20  ;;  %vm1190_vm1 = vcmp.eq.f32.partialorder %v1189_v23, 8.507059e+37 }
 0x970   : > { %v1157_v31 = vpop.f32.mrf.mxu3 }
 0x971   : > { %v1738_v16 = vpop.eup %1737 }
 0x972   : > { %v1181_v18 = vmul.f32 %v1738_v16, %v1177_v14  ;;  %vm1186_vm14 = vweird.f32 %v1738_v16 }
 0x973   : > { %vm1187_vm0 = vmor %vm1185_vm15, %vm1186_vm14 }
 0x974   : > { %v1182_v19 = vsub.f32 1.0, %v1181_v18 }
 0x976   : > { %v1183_v21 = vmul.f32 %v1738_v16, %v1182_v19 }
 0x978   : > { %v1184_v25 = vadd.f32 %v1738_v16, %v1183_v21 }
 0x97a   : > { %v1188_v28 = vsel %vm1187_vm0, %v1738_v16, %v1184_v25 }
 0x97b   : > { %v1193_v12 = vsel %vm1190_vm1, %v1192_v27, %v1188_v28  ;;  %v1380_v28 = vld [vmem:[%s2507_s16 + $0x30] sm:$0xff] }
 0x97c   : > { %v1194_v32 = vmul.f32 %v1193_v12, %v1157_v31  ;;  %v1381_v31 = vld [vmem:[%s2507_s16 + $0x38] sm:$0xff]  ;;  %1397 = vmatpush.msrb.mxu3 %v1380_v28  ;;  %v1378_v12 = vld [vmem:[%s2507_s16 + $0x20] sm:$0xff] }
 0x97d   : > { %1417 = vmatpush.msrb.mxu1 %v1381_v31 }
 0x97e   : > { %1613 = vmatmul.msk.f32.vlgmr.msra.gmra.mxu3 %vm670_vm2, %v1194_v32  ;;  %v1379_v32 = vld [vmem:[%s2507_s16 + $0x28] sm:$0xff] }
 0x97f   : > { %1398 = vmatpush.msrb.mxu3 %v1378_v12  ;;  %1418 = vmatpush.msrb.mxu1 %v1379_v32 }
 0xa01   : > { %v1225_v35 = vpop.f32.mrf.mxu3 }
 0xa02   : > { %v1226_v36 = vadd.f32 %v1718_v34, %v1225_v35  ;;  %v1376_v34 = vld [vmem:[%s2507_s16 + $0x10] sm:$0xff]  ;;  %v1377_v35 = vld [vmem:[%s2507_s16 + $0x18] sm:$0xff] }
 0xa03   : > { %1399 = vmatpush.msrb.mxu3 %v1376_v34  ;;  %1419 = vmatpush.msrb.mxu1 %v1377_v35  ;;  %v1507_v35 = vld [vmem:[%s2545_s29] sm:$0x1] }
 0xa04   : > { %v1228_v37 = vadd.f32 %v1226_v36, %v2190_v45  ;;  %v1636_v45 = vld [vmem:[%s2502_s11 + $0xf0] sm:$0xff]  ;;  %v1374_v36 = vld [vmem:[%s2507_s16] sm:$0xff] }
 0xa05   : > { %1320 = vmatpush.msra.mxu2 %v1636_v45  ;;  %1400 = vmatpush.msrb.mxu3 %v1374_v36  ;;  %v1456_v45 = vld [vmem:[%s2508_s17 + $0xd8] sm:$0xff] }
 0xa06   : > { %v1233_v38 = vsel %vm670_vm2, %v1228_v37, 0.0 }
 0xa07   : > { %1234 = vadd.xlane.f32.xlu0 %v1233_v38  ;;  %1321 = vmatpush.msra.mxu2 %v1635_v46  ;;  %v1460_v38 = vld [vmem:[%s2508_s17 + $0xf8] sm:$0xff]  ;;  %v1455_v46 = vld [vmem:[%s2508_s17 + $0xd0] sm:$0xff] }
 0xa08   : > { %1481 = vmatpush.msra.mxu0 %v1460_v38 }
 0xa09   : > { %1322 = vmatpush.msra.mxu2 %v1634_v49  ;;  %v1438_v49 = vld [vmem:[%s2508_s17 + $0x48] sm:$0xff] }
 0xa0b   : > { %1323 = vmatpush.msra.mxu2 %v1633_v51  ;;  %v1437_v51 = vld [vmem:[%s2508_s17 + $0x40] sm:$0xff] }
 0xa0d   : > { %1324 = vmatpush.msra.mxu2 %v1632_v52 }
 0xa0f   : > { %1325 = vmatpush.msra.mxu2 %v1631_v53  ;;  %v1452_v53 = vld [vmem:[%s2508_s17 + $0xb8] sm:$0xff] }
 0xa11   : > { %1326 = vmatpush.msra.mxu2 %v1630_v54 }
 0xa13   : > { %1327 = vmatpush.msra.mxu2 %v1629_v15  ;;  %v1451_v15 = vld [vmem:[%s2508_s17 + $0xb0] sm:$0xff] }
 0xa15   : > { %1328 = vmatpush.msra.mxu2 %v1628_v22  ;;  %v1435_v22 = vld [vmem:[%s2508_s17 + $0x30] sm:$0xff] }
 0xa17   : > { %1329 = vmatpush.msra.mxu2 %v1627_v29 }
 0xa19   : > { %1330 = vmatpush.msra.mxu2 %v1626_v17  ;;  %v1449_v17 = vld [vmem:[%s2508_s17 + $0xa0] sm:$0xff] }
 0xa1b   : > { %1331 = vmatpush.msra.mxu2 %v1625_v57  ;;  %v1448_v57 = vld [vmem:[%s2508_s17 + $0x98] sm:$0xff] }
 0xa1d   : > { %1332 = vmatpush.msra.mxu2 %v1624_v0 }
 0xa1f   : > { %1333 = vmatpush.msra.mxu2 %v1623_v1  ;;  %v1433_v1 = vld [vmem:[%s2508_s17 + $0x20] sm:$0xff] }
 0xa21   : > { %1334 = vmatpush.msra.mxu2 %v1622_v2  ;;  %v1446_v2 = vld [vmem:[%s2508_s17 + $0x88] sm:$0xff] }
 0xa7a   : > { %v1235_v39 = vpop.xlane.xlu0 %1234 }
 0xa7b   : > { %v1236_v40 = vmul.f32 %v1235_v39, %v2086_v24  ;;  %v1459_v39 = vld [vmem:[%s2508_s17 + $0xf0] sm:$0xff] }
 0xa7c   : > { %1482 = vmatpush.msra.mxu0 %v1459_v39 }
 0xa7d   : > { %v1237_v41 = vsub.f32 %v1228_v37, %v1236_v40  ;;  %v1375_v37 = vld [vmem:[%s2507_s16 + $0x8] sm:$0xff]  ;;  %v1444_v40 = vld [vmem:[%s2508_s17 + $0x78] sm:$0xff] }
 0xa7e   : > { %1420 = vmatpush.msrb.mxu1 %v1375_v37  ;;  %1461 = vmatpush.msra.mxu3 %v1444_v40 }
 0xa7f   : > { %v1238_v42 = vmul.f32 %v1237_v41, %v1237_v41 }
 0xa81   : > { %v1239_v43 = vsel %vm670_vm2, %v1238_v42, 0.0  ;;  %v1458_v42 = vld [vmem:[%s2508_s17 + $0xe8] sm:$0xff] }
 0xa82   : > { %1240 = vadd.xlane.f32.xlu2 %v1239_v43  ;;  %1483 = vmatpush.msra.mxu0 %v1458_v42 }
 0xa84   : > { %1484 = vmatpush.msra.mxu0 %v1457_v44 }
 0xa86   : > { %1485 = vmatpush.msra.mxu0 %v1456_v45 }
 0xa88   : > { %1486 = vmatpush.msra.mxu0 %v1455_v46 }
 0xaf5   : > { %v1241_v47 = vpop.xlane.xlu2 %1240 }
 0xaf6   : > { %v1242_v48 = vmul.f32 %v1241_v47, %v2086_v24  ;;  %v1439_v47 = vld [vmem:[%s2508_s17 + $0x50] sm:$0xff] }
 0xaf8   : > { %v1243_v50 = vadd.f32 1e-05, %v1242_v48  ;;  %v1454_v48 = vld [vmem:[%s2508_s17 + $0xc8] sm:$0xff] }
 0xaf9   : > { %1487 = vmatpush.msra.mxu0 %v1454_v48 }
 0xafa   : > { %1739 = vrsqrt.f32 %v1243_v50  ;;  %vm1250_vm4 = vweird.f32 %v1243_v50 }
 0xb00   : > { %v1740_v55 = vpop.eup %1739 }
 0xb01   : > { %v1245_v13 = vmul.f32 %v1740_v55, %v1243_v50  ;;  %vm1251_vm3 = vweird.f32 %v1740_v55  ;;  %v1453_v50 = vld [vmem:[%s2508_s17 + $0xc0] sm:$0xff] }
 0xb02   : > { %vm1252_vm5 = vmor %vm1250_vm4, %vm1251_vm3  ;;  %1488 = vmatpush.msra.mxu0 %v1453_v50 }
 0xb03   : > { %v1246_v56 = vmul.f32 %v1740_v55, %v1245_v13 }
 0xb04   : > { %1489 = vmatpush.msra.mxu0 %v1452_v53 }
 0xb05   : > { %v1247_v33 = vmul.f32 0.5, %v1246_v56  ;;  %v1450_v56 = vld [vmem:[%s2508_s17 + $0xa8] sm:$0xff] }
 0xb06   : > { %1490 = vmatpush.msra.mxu0 %v1451_v15 }
 0xb07   : > { %v1248_v30 = vsub.f32 1.5, %v1247_v33  ;;  %v1434_v33 = vld [vmem:[%s2508_s17 + $0x28] sm:$0xff] }
 0xb08   : > { %1491 = vmatpush.msra.mxu0 %v1450_v56 }
 0xb09   : > { %v1249_v26 = vmul.f32 %v1740_v55, %v1248_v30 }
 0xb0a   : > { %1492 = vmatpush.msra.mxu0 %v1449_v17 }
 0xb0b   : > { %v1253_v59 = vsel %vm1252_vm5, %v1740_v55, %v1249_v26  ;;  %v1436_v55 = vld [vmem:[%s2508_s17 + $0x38] sm:$0xff] }
 0xb0c   : > { %v1254_v60 = vmul.f32 %v1253_v59, %v1237_v41  ;;  %v1443_v41 = vld [vmem:[%s2508_s17 + $0x70] sm:$0xff]  ;;  %1493 = vmatpush.msra.mxu0 %v1448_v57 }
 0xb0d   : > { %1462 = vmatpush.msra.mxu3 %v1443_v41  ;;  %v1447_v59 = vld [vmem:[%s2508_s17 + $0x90] sm:$0xff] }
 0xb0e   : > { %v1258_v62 = vmul.f32 %v1719_v58, %v1254_v60  ;;  %v1723_v58 = vld [vmem:[%s2504_s13 + $0x1] ss:$0 sm:$0xff]  ;;  %1494 = vmatpush.msra.mxu0 %v1447_v59 }
 0xb0f   : > { %1463 = vmatpush.msra.mxu3 %v1442_v6 }
 0xb10   : > { %v1262_v63 = vadd.f32 %v1720_v61, %v1258_v62  ;;  %v1724_v62 = vld [vmem:[%s2505_s14 + $0x1] ss:$0 sm:$0xff]  ;;  %1495 = vmatpush.msra.mxu0 %v1446_v2 }
 0xb11   : > { %1464 = vmatpush.msra.mxu3 %v1441_v7 }
 0xb12   : > { %1621 = vmatmul.msk.f32.vlgmr.msra.gmra.mxu1 %vm670_vm2, %v1262_v63 }
 0xb8f   : > { %v1293_v4 = vpop.f32.mrf.mxu1 }
 0xb90   : > { %v1294_v5 = vadd.f32 %v1721_v3, %v1293_v4  ;;  %v1432_v3 = vld [vmem:[%s2508_s17 + $0x18] sm:$0xff]  ;;  %v1445_v4 = vld [vmem:[%s2508_s17 + $0x80] sm:$0xff] }
 0xb91   : > { %1496 = vmatpush.msra.mxu0 %v1445_v4 }
 0xb92   : > { %v1296_v10 = vmax.f32 %v1294_v5, 0.0  ;;  %v1431_v5 = vld [vmem:[%s2508_s17 + $0x10] sm:$0xff] }
 0xb94   : > { %1335 = vmatmul.f32.vlgmr.msra.gmra.mxu2 %v1296_v10  ;;  %v1430_v10 = vld [vmem:[%s2508_s17 + $0x8] sm:$0xff] }
 0xc17   : > { %v1336_v14 = vpop.f32.mrf.mxu2 }
 0xc18   : > { %v1337_v16 = vadd.f32 %v1722_v11, %v1336_v14  ;;  %v1429_v11 = vld [vmem:[%s2508_s17] sm:$0xff]  ;;  %v1426_v14 = vld [vmem:[%s2510_s19 + $0x8] sm:$0xff] }
 0xc1a   : > { %v1339_v18 = vadd.f32 %v1337_v16, %v1262_v63 }
 0xc1c   : > { %v1344_v19 = vsel %vm670_vm2, %v1339_v18, 0.0 }
 0xc1d   : > { %1345 = vadd.xlane.f32.xlu1 %v1344_v19  ;;  %v1425_v19 = vld [vmem:[%s2510_s19] sm:$0xff] }
 0xc90   : > { %v1346_v20 = vpop.xlane.xlu1 %1345 }
 0xc91   : > { %v1347_v21 = vmul.f32 %v1346_v20, %v2086_v24 }
 0xc93   : > { %v2315_v23 = vsub.f32 %v1339_v18, %v1347_v21 }
 0xc95   : > { %v1349_v25 = vmul.f32 %v2315_v23, %v2315_v23 }
 0xc97   : > { %v1350_v27 = vsel %vm670_vm2, %v1349_v25, 0.0 }
 0xc98   : > { %1351 = vadd.xlane.f32.xlu1 %v1350_v27 }
 0xd0b   : > { %v1352_v43 = vpop.xlane.xlu1 %1351 }
 0xd0c   : > { %v1353_v8 = vmul.f32 %v1352_v43, %v2086_v24  ;;  %v1440_v24 = vld [vmem:[%s2508_s17 + $0x58] sm:$0xff] }
 0xd0d   : > { %1465 = vmatpush.msra.mxu3 %v1440_v24 }
 0xd0e   : > { %v1354_v9 = vadd.f32 1e-05, %v1353_v8 }
 0xd0f   : > { %1466 = vmatpush.msra.mxu3 %v1439_v47 }
 0xd10   : > { %1741 = vrsqrt.f32 %v1354_v9  ;;  %vm1361_vm7 = vweird.f32 %v1354_v9 }
 0xd11   : > { %1467 = vmatpush.msra.mxu3 %v1438_v49 }
 0xd13   : > { %1468 = vmatpush.msra.mxu3 %v1437_v51 }
 0xd15   : > { %1469 = vmatpush.msra.mxu3 %v1436_v55 }
 0xd16   : > { %v1742_v52 = vpop.eup %1741 }
 0xd17   : > { %v1356_v54 = vmul.f32 %v1742_v52, %v1354_v9  ;;  %1470 = vmatpush.msra.mxu3 %v1435_v22  ;;  %vm1362_vm6 = vweird.f32 %v1742_v52 }
 0xd18   : > { %vm1363_vm8 = vmor %vm1361_vm7, %vm1362_vm6 }
 0xd19   : > { %v1357_v13 = vmul.f32 %v1742_v52, %v1356_v54  ;;  %1471 = vmatpush.msra.mxu3 %v1434_v33 }
 0xd1b   : > { %v1358_v29 = vmul.f32 0.5, %v1357_v13  ;;  %1472 = vmatpush.msra.mxu3 %v1433_v1 }
 0xd1d   : > { %v1359_v30 = vsub.f32 1.5, %v1358_v29  ;;  %1473 = vmatpush.msra.mxu3 %v1432_v3 }
 0xd1f   : > { %v1360_v26 = vmul.f32 %v1742_v52, %v1359_v30  ;;  %1474 = vmatpush.msra.mxu3 %v1431_v5 }
 0xd21   : > { %v1364_v60 = vsel %vm1363_vm8, %v1742_v52, %v1360_v26  ;;  %1475 = vmatpush.msra.mxu3 %v1430_v10 }
 0xd22   : > { %v1365_v61 = vmul.f32 %v1364_v60, %v2315_v23 }
 0xd23   : > { %1476 = vmatpush.msra.mxu3 %v1429_v11 }
 0xd24   : > { %v1369_v63 = vmul.f32 %v1723_v58, %v1365_v61 }
 0xd26   : > { %v1373_v0 = vadd.f32 %v1724_v62, %v1369_v63 }
 0xd28   : > { %1641 = vmatmul.msk.f32.vlgmr.msrb.gmra.mxu3 %vm670_vm2, %v1373_v0  ;;  %1642 = vmatmul.msk.f32.vlgmr.msrb.gmra.mxu1 %vm670_vm2, %v1373_v0 }
 0xda5   : > { %v1422_v16 = vpop.f32.mrf.mxu1 }
 0xda6   : > { %v1428_v18 = vmul.f32 %v1426_v14, %v1422_v16 }
 0xda8   : > { %1497 = vmatmul.f32.vlgmr.msra.gmra.mxu0 %v1428_v18 }
 0xdab   : > { %v1402_v20 = vpop.f32.mrf.mxu3 }
 0xdac   : > { %v1427_v21 = vmul.f32 %v1425_v19, %v1402_v20 }
 0xdae   : > { %1477 = vmatmul.f32.vlgmr.msra.gmra.mxu3 %v1427_v21 }
 0xe25   : > { %v1498_v23 = vpop.f32.mrf.mxu0 }
 0xe31   : > { %v1478_v25 = vpop.f32.mrf.mxu3 }
 0xe32   : > { %v1499_v27 = vadd.f32 %v1498_v23, %v1478_v25 }
 0xe34   : > { %v1501_v28 = vrot.slane %v1499_v27, 4 }
 0xe36   : > { %v1502_v31 = vadd.f32 %v1501_v28, %v1499_v27 }
 0xe38   : > { %v1503_v12 = vrot.slane %v1502_v31, 2 }
 0xe3a   : > { %v1504_v32 = vadd.f32 %v1503_v12, %v1502_v31 }
 0xe3c   : > { %v1505_v34 = vrot.slane %v1504_v32, 1 }
 0xe3e   : > { %v1506_v36 = vadd.f32 %v1505_v34, %v1504_v32 }
 0xe40   : > { %v1508_v37 = vadd.f32 %v1507_v35, %v1506_v36 }
 0xe42   : > { %1509 = vst [vmem:[%s619_s0] sm:$0x1] %v1508_v37 }
 0xe43   : > { %1770 = shalt.err (!%p1767_p3)
}
 0xe44   : > { %1645 = dma.vmem_to_hbm [thread:$0]  (%p1954_p5), %s1522_s30, 16, %s1524_s21, %s1511_s25  }
 0xe45 PF: > { %s2546_s26 = sld [smem:[#allocation7_spill]] }
 0xe46   : > { %s2547_s28 = sld [smem:[#allocation5_spill]] }
 0xe4b   : > { %p1651_p4 = scmp.ge.s32.totalorder %s2546_s26, 2 }
 0xe4c   : > { %s1535_s0 = sand.u32 1, %s2547_s28  }
 0xe4d   : > { %p1648_p7 = pnand %p1651_p4, %p1958_p6  ;;  %s1536_s2 = scalar_lea.sflag [#allocation3], %s1535_s0 }
 0xe4f   : > { %p1649_p8 = pneg %p1648_p7 }
 0xe51   : > { %1788 = dma.done.wait (%p1649_p8), %s1536_s2, 16  }
 0xe52   : > { %1790 = vsyncadd (%p1649_p8), %s1536_s2, 4294967280  ;;  %s2549_s24 = sld [smem:[#allocation8_spill]]  ;;  %s2552_s1 = smov %s1797_s22 }
 0xe53   : > { %s2550_s5 = sld [smem:[#allocation6_spill]] }
 0xe54   : > { %s2551_s23 = sld [smem:[#allocation9_spill]] }
 0xe58   : > { %p30_p9 = scmp.ge.s32.totalorder %s2549_s24, 4  }
 0xe59   : > { %s2553_s22 = smov %s2550_s5 }
 0xe5a   :  { %32 = sbr.rel (!%p30_p9) target bundleno = 11 (0xb), region = 147 }
 0xe5f   :  { %1541 = vsyncpa [#allocation3], 1 }
 0xe60   :  { %1543 = vsyncpa [#allocation3 + $0x1], 1 }

</bundles_post_ra>
